<compile_context>
chip_gen: v5e
topology: v5e:2x2
jax: 0.10.0
libtpu: 0.0.40
codegen_flags: <defaults>
</compile_context>

<pallas_src>
import functools

import jax
import jax.numpy as jnp
from jax import lax
from jax.experimental import pallas as pl
from jax.experimental.pallas import tpu as pltpu


# ------------------------------ Pallas kernel --------------------------------
def _fused_cnn_block_kernel(xs_ref, w1_ref, b1_ref, w2_ref, b2_ref, o_ref,
                            y1_ref, *, taps1, taps2, b_blk, r1, r2,
                            wq1, wq2, ho1, wo1, y1_rows):
    """conv1+BN1+ReLU -> (VMEM scratch) -> conv2+BN2+ReLU for `b_blk` images.

    xs_ref : (b_blk, s*s*Hq*Wq1, Cin) bf16  space-to-batch'd, halo-padded input,
                                            flattened per plane (row stride Wq1).
    w1_ref : (9*Cin, C1)              bf16  conv1 weights, BN1 scale folded,
                                            tap-major / channel-minor rows.
    b1_ref : (1, C1)                  f32   BN1 bias.
    w2_ref : (9*C1, C2)               bf16  conv2 weights, BN2 scale folded.
    b2_ref : (1, C2)                  f32   BN2 bias.
    o_ref  : (b_blk, r2, C2)                conv2 output, flat row stride wq2
                                            (cols >= wo1 garbage, dropped in the
                                            wrapper).
    y1_ref : (b_blk, y1_rows, C1)     f32   zero-haloed conv1 output (VMEM only).
    """
    c1 = w1_ref.shape[1]
    c2 = w2_ref.shape[1]
    cin = w1_ref.shape[0] // 9

    # ---- conv1 (+ folded BN1 scale): ONE large-K MXU matmul ------------------
    # Concatenate the 9 shifted (b_blk, r1, Cin) slices along channels and
    # stack the block's images along M, then contract K = 9*Cin in one dot.
    a = jnp.concatenate([xs_ref[:, pl.ds(off, r1), :] for off in taps1],
                        axis=-1)                              # (b_blk, r1, 9*Cin)
    a = a.reshape(b_blk * r1, 9 * cin)
    acc1 = jnp.dot(a, w1_ref[...], preferred_element_type=jnp.float32)
    y1 = jnp.maximum(acc1 + b1_ref[...], 0.0)                 # (b_blk*r1, C1) f32

    # ---- scatter conv1 result into the zero-haloed scratch -------------------
    if wq1 == wq2:
        # Bulk path (stride 2): conv1/conv2 flat row pitches coincide, so valid
        # pixel (i, j) lands at scratch row (wq2+1) + i*wq2 + j.  Only the thin
        # halo rows are re-zeroed each step; the invalid columns (j >= wo1) are
        # zeroed by the iota mask baked into the single bulk store, so conv2
        # always reads correct zero padding.  (Every scratch row is written
        # every step -> no reliance on cross-step scratch state; megacore-safe.)
        top = wq2 + 1
        bot = (ho1 + 1) * wq2 + 1
        y1_ref[:, pl.ds(0, top), :] = jnp.zeros((b_blk, top, c1), y1_ref.dtype)
        y1_ref[:, pl.ds(bot, y1_rows - bot), :] = jnp.zeros(
            (b_blk, y1_rows - bot, c1), y1_ref.dtype)
        col = lax.broadcasted_iota(jnp.int32, y1.shape, 0) % wq1
        y1v = jnp.where(col < wo1, y1, 0.0).reshape(b_blk, r1, c1)
        y1_ref[:, pl.ds(wq2 + 1, r1), :] = y1v
    else:
        # Row pitches differ (stride 1): per-row scatter of the valid columns;
        # everything not written must be zero, so clear the whole scratch.
        y1_ref[...] = jnp.zeros_like(y1_ref)
        y1m = y1.reshape(b_blk, r1, c1)
        for i in range(ho1):
            y1_ref[:, pl.ds((i + 1) * wq2 + 1, wo1), :] = (
                y1m[:, i * wq1:i * wq1 + wo1, :])

    # ---- conv2 (+ folded BN2 scale): ONE large-K MXU matmul ------------------
    bmat = jnp.concatenate([y1_ref[:, pl.ds(off, r2), :] for off in taps2],
                           axis=-1)                           # (b_blk, r2, 9*C1)
    bmat = bmat.reshape(b_blk * r2, 9 * c1).astype(jnp.bfloat16)  # single cast
    acc2 = jnp.dot(bmat, w2_ref[...], preferred_element_type=jnp.float32)
    y2 = jnp.maximum(acc2 + b2_ref[...], 0.0)
    o_ref[...] = y2.reshape(b_blk, r2, c2).astype(o_ref.dtype)


# ------------------------------- Glue (JAX) -----------------------------------
def _fold_bn(gamma, beta, running_mean, running_var, eps=1e-5):
    scale = gamma / jnp.sqrt(running_var + eps)
    bias = beta - running_mean * scale
    return scale, bias


@functools.partial(jax.jit, static_argnames=("stride", "batch_block"))
def cnn_block_forward(x_nchw, params, stride, batch_block=None):
    """Forward pass of CNNBlock. Input/Output are NCHW (PyTorch convention)."""
    N, Cin, H, W = x_nchw.shape
    s = int(stride)
    if s not in (1, 2):
        # Halo sizing / tap derivation only verified for stride 1 and 2.
        raise NotImplementedError("CNNBlock Pallas kernel supports stride 1 or 2")
    C1 = params["w1"].shape[-1]
    C2 = params["w2"].shape[-1]

    # conv1 output spatial size (k=3, pad=1, stride=s); conv2 preserves it.
    Ho1 = (H - 1) // s + 1
    Wo1 = (W - 1) // s + 1
    # Per-plane extents after space-to-batch, with one extra zero row/col so the
    # 9 shifted flat reads in the kernel never leave their plane.
    Hq = Ho1 + 2 // s + 1
    Wq1 = Wo1 + 2 // s + 1
    hw = Hq * Wq1
    # conv2 flat layout: zero-haloed intermediate with row stride Wq2.
    Wq2 = Wo1 + 2
    R1 = Ho1 * Wq1
    R2 = Ho1 * Wq2
    Y1_ROWS = (Ho1 + 3) * Wq2

    # Batch blocking: fold images into the matmul M dimension, but keep >= 2
    # grid steps so both TensorCores get work on v7x.
    if batch_block is None:
        b_blk = 1 if N <= 2 else N // 2
        while N % b_blk:
            b_blk -= 1
    else:
        b_blk = int(batch_block)
    assert N % b_blk == 0

    # ---- cheap wrapper-side relayout (1x input bytes; no im2col) ------------
    x = jnp.transpose(x_nchw, (0, 2, 3, 1))                    # NCHW -> NHWC
    xp = jnp.pad(x, ((0, 0), (1, Hq * s - H - 1), (1, Wq1 * s - W - 1), (0, 0)))
    xs = xp.reshape(N, Hq, s, Wq1, s, Cin)
    xs = jnp.transpose(xs, (0, 2, 4, 1, 3, 5))                 # (N, s, s, Hq, Wq1, Cin)
    xs = xs.reshape(N, s * s * hw, Cin).astype(jnp.bfloat16)

    # ---- fold BN scale into conv weights; keep only the bias for the kernel -
    s1, c1b = _fold_bn(params["g1"], params["b1"], params["m1"], params["v1"])
    s2, c2b = _fold_bn(params["g2"], params["b2"], params["m2"], params["v2"])
    w1f = (params["w1"] * s1).reshape(9 * Cin, C1).astype(jnp.bfloat16)
    w2f = (params["w2"] * s2).reshape(9 * C1, C2).astype(jnp.bfloat16)
    b1c = c1b.reshape(1, C1).astype(jnp.float32)
    b2c = c2b.reshape(1, C2).astype(jnp.float32)

    # Static per-tap row offsets into the flat buffers.
    taps1 = tuple(((di % s) * s + (dj % s)) * hw + (di // s) * Wq1 + (dj // s)
                  for di in range(3) for dj in range(3))
    taps2 = tuple(di * Wq2 + dj for di in range(3) for dj in range(3))

    kernel = functools.partial(
        _fused_cnn_block_kernel, taps1=taps1, taps2=taps2, b_blk=b_blk,
        r1=R1, r2=R2, wq1=Wq1, wq2=Wq2, ho1=Ho1, wo1=Wo1, y1_rows=Y1_ROWS)

    out_flat = pl.pallas_call(
        kernel,
        out_shape=jax.ShapeDtypeStruct((N, R2, C2), x_nchw.dtype),
        grid_spec=pltpu.PrefetchScalarGridSpec(
            num_scalar_prefetch=0,
            grid=(N // b_blk,),
            in_specs=[
                pl.BlockSpec((b_blk, s * s * hw, Cin), lambda n: (n, 0, 0)),
                pl.BlockSpec((9 * Cin, C1), lambda n: (0, 0)),
                pl.BlockSpec((1, C1), lambda n: (0, 0)),
                pl.BlockSpec((9 * C1, C2), lambda n: (0, 0)),
                pl.BlockSpec((1, C2), lambda n: (0, 0)),
            ],
            out_specs=pl.BlockSpec((b_blk, R2, C2), lambda n: (n, 0, 0)),
            scratch_shapes=[pltpu.VMEM((b_blk, Y1_ROWS, C1), jnp.float32)],
        ),
        compiler_params=pltpu.CompilerParams(
            dimension_semantics=("parallel",)),
    )(xs, w1f, b1c, w2f, b2c)

    # Drop garbage columns (flat row stride was Wq2 > Wo1) -> NHWC -> NCHW.
    out = out_flat.reshape(N, Ho1, Wq2, C2)[:, :, :Wo1, :]
    return jnp.transpose(out, (0, 3, 1, 2))


def init_cnn_block_params(key, in_channels, out_channels):
    """Deterministic synthetic parameters matching the PyTorch module shapes."""
    ks = jax.random.split(key, 10)
    p = {}
    # Conv weights in HWIO layout: (3, 3, Cin, Cout).
    p["w1"] = jax.random.normal(ks[0], (3, 3, in_channels, out_channels), jnp.float32) * 0.1
    p["w2"] = jax.random.normal(ks[1], (3, 3, out_channels, out_channels), jnp.float32) * 0.1
    # BatchNorm1 parameters / running stats.
    p["g1"] = 1.0 + 0.1 * jax.random.normal(ks[2], (out_channels,), jnp.float32)
    p["b1"] = 0.1 * jax.random.normal(ks[3], (out_channels,), jnp.float32)
    p["m1"] = 0.1 * jax.random.normal(ks[4], (out_channels,), jnp.float32)
    p["v1"] = jax.random.uniform(ks[5], (out_channels,), jnp.float32, 0.5, 1.5)
    # BatchNorm2 parameters / running stats.
    p["g2"] = 1.0 + 0.1 * jax.random.normal(ks[6], (out_channels,), jnp.float32)
    p["b2"] = 0.1 * jax.random.normal(ks[7], (out_channels,), jnp.float32)
    p["m2"] = 0.1 * jax.random.normal(ks[8], (out_channels,), jnp.float32)
    p["v2"] = jax.random.uniform(ks[9], (out_channels,), jnp.float32, 0.5, 1.5)
    return p


# ---------------------------- Pure-JAX reference ------------------------------
def _ref_forward(x_nchw, params, stride):
    x = jnp.transpose(x_nchw, (0, 2, 3, 1))
    dn = ("NHWC", "HWIO", "NHWC")

    def conv_bn_relu(x, w, g, b, m, v, s):
        y = jax.lax.conv_general_dilated(x, w, (s, s), ((1, 1), (1, 1)),
                                         dimension_numbers=dn)
        y = (y - m) / jnp.sqrt(v + 1e-5) * g + b
        return jnp.maximum(y, 0.0)

    out = conv_bn_relu(x, params["w1"], params["g1"], params["b1"],
                       params["m1"], params["v1"], stride)
    out = conv_bn_relu(out, params["w2"], params["g2"], params["b2"],
                       params["m2"], params["v2"], 1)
    return jnp.transpose(out, (0, 3, 1, 2))


# ----------------------------------- Main --------------------------------------
if __name__ == "__main__":
    key = jax.random.PRNGKey(0)
    k_x, k_p = jax.random.split(key)

    batch, in_channels, out_channels = 2, 4, 8
    H = W = 16
    stride = 2                      # conv1 stride (CNNBlock's `stride` argument)

    x = jax.random.normal(k_x, (batch, in_channels, H, W), jnp.float32)
    params = init_cnn_block_params(k_p, in_channels, out_channels)

    out = cnn_block_forward(x, params, stride)
    out = jax.block_until_ready(out)

    ref = jax.block_until_ready(_ref_forward(x, params, stride))
    assert out.shape == (batch, out_channels, H // stride, W // stride), out.shape
    # bf16 operands (f32 accumulation) -> loosened tolerance vs f32 reference
    # (intentional: inference-mode numerics).
    assert jnp.allclose(out, ref, atol=5e-2, rtol=5e-2), (
        "mismatch vs reference, max abs err = %f"
        % float(jnp.max(jnp.abs(out - ref))))

    print("KERNEL_OK")
</pallas_src>

<mosaic_0001>
module attributes {stable_mosaic.version = 11 : i64} {
  func.func @_fused_cnn_block_kernel(%arg0: i32, %arg1: memref<1x400x4xbf16, #tpu.memory_space<vmem>>, %arg2: memref<36x8xbf16, #tpu.memory_space<vmem>>, %arg3: memref<1x8xf32, #tpu.memory_space<vmem>>, %arg4: memref<72x8xbf16, #tpu.memory_space<vmem>>, %arg5: memref<1x8xf32, #tpu.memory_space<vmem>>, %arg6: memref<1x80x8xf32, #tpu.memory_space<vmem>>, %arg7: memref<1x110x8xf32, #tpu.memory_space<vmem>>) attributes {dimension_semantics = [#tpu.dimension_semantics<parallel>], iteration_bounds = array<i64: 2>, scalar_prefetch = 0 : i64, scratch_operands = 1 : i64, tpu.core_type = #tpu.core_type<tc>, window_params = [{transform_indices = @transform_0, window_bounds = array<i64: 1, 400, 4>}, {pipeline_mode = #tpu.pipeline_mode<synchronous>, transform_indices = @transform_1, window_bounds = array<i64: 36, 8>}, {pipeline_mode = #tpu.pipeline_mode<synchronous>, transform_indices = @transform_2, window_bounds = array<i64: 1, 8>}, {pipeline_mode = #tpu.pipeline_mode<synchronous>, transform_indices = @transform_3, window_bounds = array<i64: 72, 8>}, {pipeline_mode = #tpu.pipeline_mode<synchronous>, transform_indices = @transform_4, window_bounds = array<i64: 1, 8>}, {transform_indices = @transform_5, window_bounds = array<i64: 1, 80, 8>}]} {
    %c0 = arith.constant 0 : index
    %c0_0 = arith.constant 0 : index
    %c0_1 = arith.constant 0 : index
    %0 = vector.load %arg1[%c0, %c0_0, %c0_1] : memref<1x400x4xbf16, #tpu.memory_space<vmem>>, vector<1x80x4xbf16>
    %c0_2 = arith.constant 0 : index
    %c100 = arith.constant 100 : index
    %c0_3 = arith.constant 0 : index
    %1 = vector.load %arg1[%c0_2, %c100, %c0_3] : memref<1x400x4xbf16, #tpu.memory_space<vmem>>, vector<1x80x4xbf16>
    %c0_4 = arith.constant 0 : index
    %c1 = arith.constant 1 : index
    %c0_5 = arith.constant 0 : index
    %2 = vector.load %arg1[%c0_4, %c1, %c0_5] : memref<1x400x4xbf16, #tpu.memory_space<vmem>>, vector<1x80x4xbf16>
    %c0_6 = arith.constant 0 : index
    %c200 = arith.constant 200 : index
    %c0_7 = arith.constant 0 : index
    %3 = vector.load %arg1[%c0_6, %c200, %c0_7] : memref<1x400x4xbf16, #tpu.memory_space<vmem>>, vector<1x80x4xbf16>
    %c0_8 = arith.constant 0 : index
    %c300 = arith.constant 300 : index
    %c0_9 = arith.constant 0 : index
    %4 = vector.load %arg1[%c0_8, %c300, %c0_9] : memref<1x400x4xbf16, #tpu.memory_space<vmem>>, vector<1x80x4xbf16>
    %c0_10 = arith.constant 0 : index
    %c201 = arith.constant 201 : index
    %c0_11 = arith.constant 0 : index
    %5 = vector.load %arg1[%c0_10, %c201, %c0_11] : memref<1x400x4xbf16, #tpu.memory_space<vmem>>, vector<1x80x4xbf16>
    %c0_12 = arith.constant 0 : index
    %c10 = arith.constant 10 : index
    %c0_13 = arith.constant 0 : index
    %6 = vector.load %arg1[%c0_12, %c10, %c0_13] : memref<1x400x4xbf16, #tpu.memory_space<vmem>>, vector<1x80x4xbf16>
    %c0_14 = arith.constant 0 : index
    %c110 = arith.constant 110 : index
    %c0_15 = arith.constant 0 : index
    %7 = vector.load %arg1[%c0_14, %c110, %c0_15] : memref<1x400x4xbf16, #tpu.memory_space<vmem>>, vector<1x80x4xbf16>
    %c0_16 = arith.constant 0 : index
    %c11 = arith.constant 11 : index
    %c0_17 = arith.constant 0 : index
    %8 = vector.load %arg1[%c0_16, %c11, %c0_17] : memref<1x400x4xbf16, #tpu.memory_space<vmem>>, vector<1x80x4xbf16>
    %9 = tpu.concatenate %0, %1, %2, %3, %4, %5, %6, %7, %8 in 2 : vector<1x80x4xbf16>, vector<1x80x4xbf16>, vector<1x80x4xbf16>, vector<1x80x4xbf16>, vector<1x80x4xbf16>, vector<1x80x4xbf16>, vector<1x80x4xbf16>, vector<1x80x4xbf16>, vector<1x80x4xbf16> -> vector<1x80x36xbf16>
    %10 = vector.shape_cast %9 : vector<1x80x36xbf16> to vector<80x36xbf16>
    %c0_18 = arith.constant 0 : index
    %c0_19 = arith.constant 0 : index
    %11 = vector.load %arg2[%c0_18, %c0_19] : memref<36x8xbf16, #tpu.memory_space<vmem>>, vector<36x8xbf16>
    %cst = arith.constant dense<0.000000e+00> : vector<80x8xf32>
    %12 = tpu.matmul %10, %11, %cst {dimension_numbers = #tpu.dot_dimension_numbers<[1], [0], [0], [1], [0, 0, 1, 1], [], []>} : vector<80x36xbf16>, vector<36x8xbf16>, vector<80x8xf32> -> vector<80x8xf32>
    %c0_20 = arith.constant 0 : index
    %c0_21 = arith.constant 0 : index
    %13 = vector.load %arg3[%c0_20, %c0_21] : memref<1x8xf32, #tpu.memory_space<vmem>>, vector<1x8xf32>
    %14 = vector.broadcast %13 : vector<1x8xf32> to vector<80x8xf32>
    %15 = arith.addf %12, %14 : vector<80x8xf32>
    %cst_22 = arith.constant 0.000000e+00 : f32
    %16 = vector.broadcast %cst_22 : f32 to vector<80x8xf32>
    %17 = arith.maximumf %15, %16 : vector<80x8xf32>
    %cst_23 = arith.constant 0.000000e+00 : f32
    %18 = vector.broadcast %cst_23 : f32 to vector<1x11x8xf32>
    %c0_24 = arith.constant 0 : index
    %c0_25 = arith.constant 0 : index
    %c0_26 = arith.constant 0 : index
    %19 = vector.load %arg7[%c0_24, %c0_25, %c0_26] : memref<1x110x8xf32, #tpu.memory_space<vmem>>, vector<1x11x8xf32>
    tpu.vector_store %arg7[%c0_24, %c0_25, %c0_26], %18 {strides = array<i32>} : memref<1x110x8xf32, #tpu.memory_space<vmem>>, vector<1x11x8xf32>,
    %cst_27 = arith.constant 0.000000e+00 : f32
    %20 = vector.broadcast %cst_27 : f32 to vector<1x19x8xf32>
    %c0_28 = arith.constant 0 : index
    %c91 = arith.constant 91 : index
    %c0_29 = arith.constant 0 : index
    %21 = vector.load %arg7[%c0_28, %c91, %c0_29] : memref<1x110x8xf32, #tpu.memory_space<vmem>>, vector<1x19x8xf32>
    tpu.vector_store %arg7[%c0_28, %c91, %c0_29], %20 {strides = array<i32>} : memref<1x110x8xf32, #tpu.memory_space<vmem>>, vector<1x19x8xf32>,
    %22 = tpu.iota {dimensions = array<i32: 0>} : vector<80x8xi32>
    %c10_i32 = arith.constant 10 : i32
    %c0_i32 = arith.constant 0 : i32
    %23 = arith.cmpi eq, %c10_i32, %c0_i32 : i32
    %c1_i32 = arith.constant 1 : i32
    %24 = arith.select %23, %c1_i32, %c10_i32 : i32
    %25 = vector.broadcast %24 : i32 to vector<80x8xi32>
    %26 = arith.remsi %22, %25 : vector<80x8xi32>
    %c0_i32_30 = arith.constant 0 : i32
    %27 = vector.broadcast %c0_i32_30 : i32 to vector<80x8xi32>
    %28 = arith.cmpi ne, %26, %27 : vector<80x8xi32>
    %c0_i32_31 = arith.constant 0 : i32
    %29 = vector.broadcast %c0_i32_31 : i32 to vector<80x8xi32>
    %30 = arith.cmpi slt, %26, %29 : vector<80x8xi32>
    %c0_i32_32 = arith.constant 0 : i32
    %31 = arith.cmpi slt, %24, %c0_i32_32 : i32
    %32 = vector.broadcast %31 : i1 to vector<80x8xi1>
    %33 = vector.broadcast %32 : vector<80x8xi1> to vector<80x8xi1>
    %34 = arith.xori %30, %33 : vector<80x8xi1>
    %35 = arith.andi %34, %28 : vector<80x8xi1>
    %36 = vector.broadcast %24 : i32 to vector<80x8xi32>
    %37 = arith.addi %26, %36 : vector<80x8xi32>
    %38 = arith.select %35, %37, %26 : vector<80x8xi1>, vector<80x8xi32>
    %c8_i32 = arith.constant 8 : i32
    %39 = vector.broadcast %c8_i32 : i32 to vector<80x8xi32>
    %40 = arith.cmpi slt, %38, %39 : vector<80x8xi32>
    %cst_33 = arith.constant 0.000000e+00 : f32
    %41 = vector.broadcast %cst_33 : f32 to vector<80x8xf32>
    %42 = arith.select %40, %17, %41 : vector<80x8xi1>, vector<80x8xf32>
    %43 = vector.shape_cast %42 : vector<80x8xf32> to vector<1x80x8xf32>
    %c0_34 = arith.constant 0 : index
    %c11_35 = arith.constant 11 : index
    %c0_36 = arith.constant 0 : index
    %44 = vector.load %arg7[%c0_34, %c11_35, %c0_36] : memref<1x110x8xf32, #tpu.memory_space<vmem>>, vector<1x80x8xf32>
    tpu.vector_store %arg7[%c0_34, %c11_35, %c0_36], %43 {strides = array<i32>} : memref<1x110x8xf32, #tpu.memory_space<vmem>>, vector<1x80x8xf32>,
    %c0_37 = arith.constant 0 : index
    %c0_38 = arith.constant 0 : index
    %c0_39 = arith.constant 0 : index
    %45 = vector.load %arg7[%c0_37, %c0_38, %c0_39] : memref<1x110x8xf32, #tpu.memory_space<vmem>>, vector<1x80x8xf32>
    %c0_40 = arith.constant 0 : index
    %c1_41 = arith.constant 1 : index
    %c0_42 = arith.constant 0 : index
    %46 = vector.load %arg7[%c0_40, %c1_41, %c0_42] : memref<1x110x8xf32, #tpu.memory_space<vmem>>, vector<1x80x8xf32>
    %c0_43 = arith.constant 0 : index
    %c2 = arith.constant 2 : index
    %c0_44 = arith.constant 0 : index
    %47 = vector.load %arg7[%c0_43, %c2, %c0_44] : memref<1x110x8xf32, #tpu.memory_space<vmem>>, vector<1x80x8xf32>
    %c0_45 = arith.constant 0 : index
    %c10_46 = arith.constant 10 : index
    %c0_47 = arith.constant 0 : index
    %48 = vector.load %arg7[%c0_45, %c10_46, %c0_47] : memref<1x110x8xf32, #tpu.memory_space<vmem>>, vector<1x80x8xf32>
    %c0_48 = arith.constant 0 : index
    %c11_49 = arith.constant 11 : index
    %c0_50 = arith.constant 0 : index
    %49 = vector.load %arg7[%c0_48, %c11_49, %c0_50] : memref<1x110x8xf32, #tpu.memory_space<vmem>>, vector<1x80x8xf32>
    %c0_51 = arith.constant 0 : index
    %c12 = arith.constant 12 : index
    %c0_52 = arith.constant 0 : index
    %50 = vector.load %arg7[%c0_51, %c12, %c0_52] : memref<1x110x8xf32, #tpu.memory_space<vmem>>, vector<1x80x8xf32>
    %c0_53 = arith.constant 0 : index
    %c20 = arith.constant 20 : index
    %c0_54 = arith.constant 0 : index
    %51 = vector.load %arg7[%c0_53, %c20, %c0_54] : memref<1x110x8xf32, #tpu.memory_space<vmem>>, vector<1x80x8xf32>
    %c0_55 = arith.constant 0 : index
    %c21 = arith.constant 21 : index
    %c0_56 = arith.constant 0 : index
    %52 = vector.load %arg7[%c0_55, %c21, %c0_56] : memref<1x110x8xf32, #tpu.memory_space<vmem>>, vector<1x80x8xf32>
    %c0_57 = arith.constant 0 : index
    %c22 = arith.constant 22 : index
    %c0_58 = arith.constant 0 : index
    %53 = vector.load %arg7[%c0_57, %c22, %c0_58] : memref<1x110x8xf32, #tpu.memory_space<vmem>>, vector<1x80x8xf32>
    %54 = tpu.concatenate %45, %46, %47, %48, %49, %50, %51, %52, %53 in 2 : vector<1x80x8xf32>, vector<1x80x8xf32>, vector<1x80x8xf32>, vector<1x80x8xf32>, vector<1x80x8xf32>, vector<1x80x8xf32>, vector<1x80x8xf32>, vector<1x80x8xf32>, vector<1x80x8xf32> -> vector<1x80x72xf32>
    %55 = vector.shape_cast %54 : vector<1x80x72xf32> to vector<80x72xf32>
    %56 = arith.truncf %55 : vector<80x72xf32> to vector<80x72xbf16>
    %c0_59 = arith.constant 0 : index
    %c0_60 = arith.constant 0 : index
    %57 = vector.load %arg4[%c0_59, %c0_60] : memref<72x8xbf16, #tpu.memory_space<vmem>>, vector<72x8xbf16>
    %cst_61 = arith.constant dense<0.000000e+00> : vector<80x8xf32>
    %58 = tpu.matmul %56, %57, %cst_61 {dimension_numbers = #tpu.dot_dimension_numbers<[1], [0], [0], [1], [0, 0, 1, 1], [], []>} : vector<80x72xbf16>, vector<72x8xbf16>, vector<80x8xf32> -> vector<80x8xf32>
    %c0_62 = arith.constant 0 : index
    %c0_63 = arith.constant 0 : index
    %59 = vector.load %arg5[%c0_62, %c0_63] : memref<1x8xf32, #tpu.memory_space<vmem>>, vector<1x8xf32>
    %60 = vector.broadcast %59 : vector<1x8xf32> to vector<80x8xf32>
    %61 = arith.addf %58, %60 : vector<80x8xf32>
    %cst_64 = arith.constant 0.000000e+00 : f32
    %62 = vector.broadcast %cst_64 : f32 to vector<80x8xf32>
    %63 = arith.maximumf %61, %62 : vector<80x8xf32>
    %64 = vector.shape_cast %63 : vector<80x8xf32> to vector<1x80x8xf32>
    %c0_65 = arith.constant 0 : index
    %c0_66 = arith.constant 0 : index
    %c0_67 = arith.constant 0 : index
    %65 = vector.load %arg6[%c0_65, %c0_66, %c0_67] : memref<1x80x8xf32, #tpu.memory_space<vmem>>, vector<1x80x8xf32>
    tpu.vector_store %arg6[%c0_65, %c0_66, %c0_67], %64 {strides = array<i32>} : memref<1x80x8xf32, #tpu.memory_space<vmem>>, vector<1x80x8xf32>,
    return
  }
  func.func @transform_0(%arg0: i32) -> (i32, i32, i32) {
    %c0_i32 = arith.constant 0 : i32
    %c0_i32_0 = arith.constant 0 : i32
    %c0_i32_1 = arith.constant 0 : i32
    return %arg0, %c0_i32, %c0_i32_0 : i32, i32, i32
  }
  func.func @transform_1(%arg0: i32) -> (i32, i32) {
    %c0_i32 = arith.constant 0 : i32
    %c0_i32_0 = arith.constant 0 : i32
    %c0_i32_1 = arith.constant 0 : i32
    return %c0_i32, %c0_i32_0 : i32, i32
  }
  func.func @transform_2(%arg0: i32) -> (i32, i32) {
    %c0_i32 = arith.constant 0 : i32
    %c0_i32_0 = arith.constant 0 : i32
    %c0_i32_1 = arith.constant 0 : i32
    return %c0_i32, %c0_i32_0 : i32, i32
  }
  func.func @transform_3(%arg0: i32) -> (i32, i32) {
    %c0_i32 = arith.constant 0 : i32
    %c0_i32_0 = arith.constant 0 : i32
    %c0_i32_1 = arith.constant 0 : i32
    return %c0_i32, %c0_i32_0 : i32, i32
  }
  func.func @transform_4(%arg0: i32) -> (i32, i32) {
    %c0_i32 = arith.constant 0 : i32
    %c0_i32_0 = arith.constant 0 : i32
    %c0_i32_1 = arith.constant 0 : i32
    return %c0_i32, %c0_i32_0 : i32, i32
  }
  func.func @transform_5(%arg0: i32) -> (i32, i32, i32) {
    %c0_i32 = arith.constant 0 : i32
    %c0_i32_0 = arith.constant 0 : i32
    %c0_i32_1 = arith.constant 0 : i32
    return %arg0, %c0_i32, %c0_i32_0 : i32, i32, i32
  }
}

</mosaic_0001>

<bundles_post_ra>
// kernel: cnn_block_forward.1
= control target key start
LH: loop header
LB: loop body
LE: loop exit
PB: predicated region body
PF: predicated region fallthrough
CT: control target
= control target key end

     0   :  { %s2377_s18 = smov 0   ;;  %s3276_s0 = inlined_call_operand.vmem [shape: bf16[2,400,4], index: 0, kind: input, shape index: {}]   ;;  %s3277_s1 = inlined_call_operand.vmem [shape: bf16[36,8], index: 1, kind: input, shape index: {}]   ;;  %s3278_s2 = inlined_call_operand.vmem [shape: f32[1,8], index: 2, kind: input, shape index: {}]   ;;  %s3279_s3 = inlined_call_operand.vmem [shape: bf16[72,8], index: 3, kind: input, shape index: {}]   ;;  %s3280_s4 = inlined_call_operand.vmem [shape: f32[1,8], index: 4, kind: input, shape index: {}]   ;;  %s3281_s5 = inlined_call_operand.vmem [shape: f32[2,80,8], index: 5, kind: output, shape index: {}]  }
   0x1 LB: > { %s1876_s19 = sadd.s32 4294967295, %s2331_s18   ;;  %p1880_p0 = scmp.ge.s32.totalorder %s2331_s18, 1  ;;  %s2331_s18 = sphi %s2377_s18, %s15_s18  }
   0x2   : > { %p187_p1 = scmp.lt.s32.totalorder %s2331_s18, 3 }
   0x4   : > { %p188_p2 = pnand %p1880_p0, %p187_p1 }
   0x5   : > { %p215_p3 = scmp.lt.s32.totalorder (!%p188_p2), %s1876_s19, 1  ;;  %s2333_s24 = smov (!%p188_p2), 12  }
   0x6   : > { %191 = sbr.rel (%p188_p2) target bundleno = 728 (0x2d8), region = 40  ;;  %s2334_s25 = smov (!%p188_p2), 4  }
   0x7   : > { %s2335_s26 = smov (!%p188_p2), 16   ;;  %s2336_s27 = smov (!%p188_p2), 28  }
   0x8   : > { %s2337_s28 = smov (!%p188_p2), 24   ;;  %s2338_s29 = smov (!%p188_p2), 32  }
   0x9   : > { %s2339_s30 = smov (!%p188_p2), 8   ;;  %s2340_s6 = smov (!%p188_p2), 20  }
   0xa   : > { %s2343_s15 = smov (!%p188_p2), 56   ;;  %s2344_s16 = smov (!%p188_p2), 40  }
   0xb   : > { %s3303_s19 = smov (!%p215_p3, %s1876_s19), 1  ;;  %vm330_vm0 = vcmask 1045504   ;;  %vm597_vm1 = vcmask 1044480   ;;  %vm563_vm2 = vcmask 1046528   ;;  %vm622_vm3 = vsmask.f32 6400 }
   0xc   : > { %s2099_s20 = smul.u32 200, %s3303_s19  ;;  %vm355_vm4 = vsmask.f32 7424  ;;  %vm809_vm5 = vcmask 1041408   ;;  %vm686_vm6 = vcmask 31744   ;;  %vm697_vm7 = vcmask 64512  }
   0xd   : > { %vm708_vm8 = vcmask 97280   ;;  %vm719_vm9 = vcmask 130048   ;;  %vm730_vm10 = vcmask 162816   ;;  %vm741_vm11 = vcmask 195584   ;;  %s2345_s17 = smov 48   ;;  %s2100_s8 = smul.u32 80, %s3303_s19 }
   0xe   : > { %s2391_s23 = scalar_lea.vmem %s3276_s0, %s2099_s20  ;;  %vm752_vm12 = vcmask 228352   ;;  %vm763_vm13 = vcmask 261120   ;;  %vm798_vm14 = vcmask 293888   ;;  %s2346_s20 = smov 64  }
   0xf   : > { %v2394_v0 = vld [vmem:[%s2391_s23 + $0x64] sm:$0xff]  ;;  %v1889_v1 = vld [vmem:[%s2391_s23 + $0x30] sm:$0xc]  ;;  %v1968_v2 = vld [vmem:[%s2391_s23 + $0x30] sm:$0xf0]  ;;  %s3251_s11 = scalar_lea.vmem %s3281_s5, %s2100_s8 }
  0x10   : > { %v2399_v3 = vld [vmem:[%s2391_s23 + $0x38] sm:$0xff]   ;;  %v1890_v4 = vor.u32 %v1968_v2, %v1889_v1  ;;  %v1913_v5 = vld [vmem:[%s2391_s23 + $0x94] sm:$0xc]  ;;  %435 = vrot.lane.b32.xlu1 %v2394_v0, %s2333_s24  ;;  %v2074_v14 = vld [vmem:[%s2391_s23 + $0x4] sm:$0xf0]   ;;  %v500_v55 = vshll.u32 %v2394_v0, 16 }
  0x11   : > { %v1974_v6 = vld [vmem:[%s2391_s23 + $0x94] sm:$0xf0]  ;;  %v332_v7 = vrot.slane %v2399_v3, 2  ;;  %v2407_v8 = vld [vmem:[%s2391_s23 + $0x9c] sm:$0xff]  ;;  %v2051_v13 = vld [vmem:[%s2391_s23 + $0x34] sm:$0x8] }
  0x12   : > { %v1914_v9 = vor.u32 %v1974_v6, %v1913_v5  ;;  %v2082_v10 = vld [vmem:[%s2391_s23 + $0x34] sm:$0xf0]   ;;  %v2411_v11 = vld [vmem:[%s2391_s23 + $0x3c] sm:$0xff]   ;;  %v331_v12 = vrot.slane %v1890_v4, 2  ;;  %v2416_v15 = vld [vmem:[%s2391_s23 + $0xc] sm:$0xff]   ;;  %v474_v17 = vrot.slane %v2407_v8, 2 }
  0x13   : > { %v2052_v18 = vor.u32 %v2082_v10, %v2051_v13  ;;  %v2027_v19 = vld [vmem:[%s2391_s23 + $0x4] sm:$0xe]  ;;  %v632_v23 = vshrl.u32 %v2416_v15, 16  ;;  %v635_v24 = vshll.u32 %v2416_v15, 16  ;;  %v599_v27 = vrot.slane %v2411_v11, 3  ;;  %v2435_v33 = vld [vmem:[%s2391_s23 + $0x8] sm:$0xff]  }
  0x14   : > { %v473_v16 = vrot.slane %v1914_v9, 2  ;;  %v2421_v20 = vld [vmem:[%s2391_s23] sm:$0xff]  ;;  %v333_v21 = vsel %vm330_vm0, %v331_v12, %v332_v7  ;;  %v2028_v22 = vor.u32 %v2074_v14, %v2027_v19  ;;  %v2438_v34 = vld [vmem:[%s2391_s23 + $0x18] sm:$0xff]   ;;  %v364_v40 = vshll.u32 %v2435_v33, 16  ;;  %v2454_v47 = vld [vmem:[%s2391_s23 + $0x48] sm:$0xff]  }
  0x15   : > { %342 = vrot.lane.b32.xlu0 %v333_v21, %s2334_s25  ;;  %v598_v26 = vrot.slane %v2052_v18, 3  ;;  %v359_v28 = vshll.u32 %v2421_v20, 16  ;;  %v634_v31 = vrot.slane %v632_v23, 1  ;;  %v637_v32 = vrot.slane %v635_v24, 2  ;;  %v2450_v44 = vld [vmem:[%s2391_s23 + $0x20] sm:$0xff]   ;;  %v2457_v48 = vld [vmem:[%s2391_s23 + $0x50] sm:$0xff]  }
  0x16   : > { %v475_v25 = vsel %vm330_vm0, %v473_v16, %v474_v17  ;;  %v624_v29 = vshrl.u32 %v2028_v22, 16  ;;  %v627_v30 = vshll.u32 %v2028_v22, 16  ;;  %v357_v37 = vshrl.u32 %v2421_v20, 16  ;;  %v2474_v59 = vld [vmem:[%s2391_s23 + $0x6c] sm:$0xff]  ;;  %v2489_v5 = vld [vmem:[%s2391_s23 + $0x40] sm:$0xff]  }
  0x17   : > { %v600_v38 = vsel %vm597_vm1, %v598_v26, %v599_v27  ;;  %v361_v39 = vrot.slane %v359_v28, 1  ;;  %v380_v41 = vshll.u32 %v2438_v34, 16  ;;  %v2447_v43 = vor.u32 %v637_v32, %v634_v31  ;;  %v1972_v6 = vld [vmem:[%s2391_s23 + $0x7c] sm:$0xff]  ;;  %v2507_v18 = vld [vmem:[%s2391_s23 + $0x84] sm:$0xff]  ;;  %v2530_v31 = vld [vmem:[%s2391_s23 + $0xac] sm:$0xff] }
  0x18   : > { %v626_v35 = vrot.slane %v624_v29, 1  ;;  %v629_v36 = vrot.slane %v627_v30, 2  ;;  %484 = vrot.lane.b32.xlu1 %v475_v25, %s2335_s26  ;;  %v564_v45 = vrot.slane %v2028_v22, 1  ;;  %v565_v46 = vrot.slane %v2416_v15, 1  ;;  %v2525_v29 = vld [vmem:[%s2391_s23 + $0xa4] sm:$0xff]  ;;  %v2533_v32 = vld [vmem:[%s2391_s23 + $0xb4] sm:$0xff] }
  0x19   : > { %v384_v49 = vshrl.u32 %v2438_v34, 16  ;;  %v362_v51 = vor.u32 %v361_v39, %v357_v37  ;;  %v366_v52 = vrot.slane %v364_v40, 1  ;;  %v2464_v53 = vrot.slane %v380_v41, 1  ;;  %v2543_v37 = vld [vmem:[%s2391_s23 + $0x24] sm:$0xff] }
  0x1a   : > { %v630_v42 = vor.u32 %v629_v36, %v626_v35  ;;  %v566_v50 = vsel %vm563_vm2, %v564_v45, %v565_v46  ;;  %v388_v54 = vshll.u32 %v2450_v44, 16  ;;  %v336_v57 = vrot.slane %v2454_v47, 2  ;;  %v2536_v35 = vld [vmem:[%s2391_s23 + $0x14] sm:$0xff]   ;;  %v2540_v36 = vld [vmem:[%s2391_s23 + $0x1c] sm:$0xff]  }
  0x1b   : > { %575 = vrot.lane.b32.xlu2 %v566_v50, %s2337_s28  ;;  %v338_v58 = vrot.slane %v2457_v48, 2  ;;  %v367_v60 = vsel %vm355_vm4, %v362_v51, %v366_v52  ;;  %v386_v61 = vor.u32 %v384_v49, %v2464_v53  ;;  %v498_v1 = vshrl.u32 %v2394_v0, 16  ;;  %v2498_v0 = vld [vmem:[%s2391_s23 + $0x10] sm:$0xff]   ;;  %v272_v48 = vld [vmem:[%s2391_s23 + $0x2c] sm:$0x1] }
  0x1c   : > { %v639_v56 = vsel %vm622_vm3, %v630_v42, %v2447_v43  ;;  %v2479_v62 = vrot.slane %v388_v54, 1  ;;  %v502_v2 = vrot.slane %v500_v55, 1  ;;  %v505_v4 = vshll.u32 %v2474_v59, 16  ;;  %v2552_v42 = vld [vmem:[%s2391_s23 + $0x74] sm:$0xff] }
  0x1d   : > { %609 = vrot.lane.b32.xlu0 %v600_v38, %s2336_s27  ;;  %v339_v63 = vsel %vm330_vm0, %v336_v57, %v338_v58  ;;  %v334_v10 = vrot.slane %v2489_v5, 2  ;;  %v521_v14 = vshll.u32 %v1972_v6, 16  ;;  %v368_v21 = vshrl.u32 %v2435_v33, 16 }
  0x1e   : > { %v391_v9 = vsel %vm355_vm4, %v386_v61, %v2479_v62  ;;  %v503_v12 = vor.u32 %v502_v2, %v498_v1  ;;  %v507_v13 = vrot.slane %v505_v4, 1  ;;  %v372_v22 = vshll.u32 %v2498_v0, 16 }
  0x1f   : > { %v335_v16 = vsel %vm330_vm0, %v332_v7, %v334_v10  ;;  %v2513_v23 = vrot.slane %v521_v14, 1  ;;  %v525_v3 = vshrl.u32 %v1972_v6, 16  ;;  %v529_v7 = vshll.u32 %v2507_v18, 16  ;;  %v246_v14 = vld [vmem:[%s2391_s23 + $0x58] sm:$0x3] }
  0x20   : > { %676 = vrot.lane.b32.xlu1 %v639_v56, %s2338_s29  ;;  %v508_v19 = vsel %vm355_vm4, %v503_v12, %v507_v13  ;;  %v370_v24 = vor.u32 %v368_v21, %v366_v52  ;;  %v2517_v25 = vrot.slane %v372_v22, 1  ;;  %v476_v39 = vrot.slane %v2525_v29, 2 }
  0x21   : > { %v527_v26 = vor.u32 %v525_v3, %v2513_v23  ;;  %v2522_v28 = vrot.slane %v529_v7, 1  ;;  %v478_v40 = vrot.slane %v2530_v31, 2  ;;  %v480_v41 = vrot.slane %v2533_v32, 2  ;;  %v276_v31 = vld [vmem:[%s2391_s23 + $0x2c] sm:$0x3] }
  0x22   : > { %v375_v30 = vsel %vm355_vm4, %v370_v24, %v2517_v25  ;;  %v567_v45 = vrot.slane %v2536_v35, 1  ;;  %v650_v49 = vshrl.u32 %v2540_v36, 16  ;;  %v653_v50 = vshll.u32 %v2540_v36, 16 }
  0x23   : > { %348 = vrot.lane.b32.xlu2 %v339_v63, %s2334_s25  ;;  %v532_v38 = vsel %vm355_vm4, %v527_v26, %v2522_v28  ;;  %v659_v51 = vshrl.u32 %v2543_v37, 16  ;;  %v662_v52 = vshll.u32 %v2543_v37, 16  ;;  %v477_v54 = vsel %vm330_vm0, %v474_v17, %v476_v39 }
  0x24   : > { %v481_v55 = vsel %vm330_vm0, %v478_v40, %v480_v41  ;;  %v509_v56 = vshrl.u32 %v2474_v59, 16  ;;  %v568_v61 = vsel %vm563_vm2, %v565_v46, %v567_v45  ;;  %v652_v8 = vrot.slane %v650_v49, 1 }
  0x25   : > { %400 = vrot.lane.b32.xlu0 %v367_v60, %s2339_s30  ;;  %v513_v60 = vshll.u32 %v2552_v42, 16  ;;  %v655_v17 = vrot.slane %v653_v50, 2  ;;  %v661_v63 = vrot.slane %v659_v51, 1  ;;  %v664_v1 = vrot.slane %v662_v52, 2 }
  0x26   : > { %v571_v2 = vrot.slane %v2543_v37, 1  ;;  %v511_v4 = vor.u32 %v509_v56, %v507_v13  ;;  %v323_v3 = vunpack.c.l.b16 %v246_v14  ;;  %v641_v26 = vshrl.u32 %v2536_v35, 16 }
  0x27   : > { %v2584_v15 = vor.u32 %v655_v17, %v652_v8  ;;  %v2586_v46 = vor.u32 %v664_v1, %v661_v63  ;;  %v337_v11 = vsel %vm330_vm0, %v334_v10, %v336_v57  ;;  %v376_v8 = vshrl.u32 %v2498_v0, 16  ;;  %v268_v57 = vld [vmem:[%s2391_s23 + $0xbc] sm:$0x3] }
  0x28   : > { %406 = vrot.lane.b32.xlu1 %v391_v9, %s2339_s30  ;;  %v2589_v9 = vld [vmem:[%s2391_s23 + $0x44] sm:$0xff]   ;;  %v329_v50 = vpack.c.b16 %v323_v3, %v323_v3  ;;  %v643_v52 = vrot.slane %v641_v26, 1  ;;  %v392_v5 = vshrl.u32 %v2450_v44, 16  ;;  %v466_v63 = vunpack.c.l.b16 %v268_v57 }
  0x29   : > { %v666_v21 = vsel %vm622_vm3, %v2584_v15, %v2586_v46  ;;  %v601_v22 = vrot.slane %v2589_v9, 3  ;;  %v378_v10 = vor.u32 %v376_v8, %v2517_v25 }
  0x2a   : > { %v340_v56 = vrot.slane %v329_v50, 2  ;;  %v472_v14 = vpack.c.b16 %v466_v63, %v466_v63 }
  0x2b   : > { %541 = vrot.lane.b32.xlu2 %v508_v19, %s2340_s6  ;;  %v2603_v19 = vld [vmem:[%s2391_s23 + $0x54] sm:$0xff]  ;;  %v602_v49 = vsel %vm597_vm1, %v599_v27, %v601_v22 }
  0x2c   : > { %v605_v24 = vrot.slane %v2603_v19, 3  ;;  %v482_v3 = vrot.slane %v472_v14, 2  ;;  %v1980_v19 = vld [vmem:[%s3277_s1 + $0x8] sm:$0xff] }
  0x2d   : > { %344 = vrot.lane.b32.xlu0 %v335_v16, %s2334_s25  ;;  %v2600_v16 = vld [vmem:[%s2391_s23 + $0x4c] sm:$0xff]  }
  0x2e   : > { %v603_v7 = vrot.slane %v2600_v16, 3 }
  0x30   : > { %437 = vrot.lane.b32.xlu1 %v2474_v59, %s2333_s24  ;;  %v569_v59 = vrot.slane %v2540_v36, 1  ;;  %v606_v51 = vsel %vm597_vm1, %v603_v7, %v605_v24 }
  0x32   : > { %v572_v12 = vsel %vm563_vm2, %v569_v59, %v571_v2  ;;  %v570_v9 = vsel %vm563_vm2, %v567_v45, %v569_v59  ;;  %v1979_v45 = vld [vmem:[%s3277_s1] sm:$0xff] }
  0x33   : > { %402 = vrot.lane.b32.xlu2 %v375_v30, %s2339_s30  ;;  %v644_v30 = vshll.u32 %v2536_v35, 16 }
  0x35   : > { %441 = vrot.lane.b32.xlu0 %v1972_v6, %s2333_s24  ;;  %v2581_v6 = vrot.slane %v513_v60, 1 }
  0x37   : > { %v516_v13 = vsel %vm355_vm4, %v511_v4, %v2581_v6  ;;  %v269_v4 = vld [vmem:[%s2391_s23 + $0x8c] sm:$0x1] }
  0x38   : > { %547 = vrot.lane.b32.xlu1 %v532_v38, %s2340_s6  ;;  %v247_v38 = vld [vmem:[%s2391_s23 + $0x28] sm:$0x1] }
  0x3b   : > { %490 = vrot.lane.b32.xlu2 %v481_v55, %s2335_s26  ;;  %v353_v55 = vunpack.c.l.b16 %v247_v38  ;;  %v483_v38 = vsel %vm330_vm0, %v480_v41, %v482_v3 }
  0x3d   : > { %486 = vrot.lane.b32.xlu0 %v477_v54, %s2335_s26  ;;  %v646_v54 = vrot.slane %v644_v30, 2  ;;  %v354_v60 = vpack.c.b16 %v353_v55, %v353_v55  ;;  %v517_v30 = vshrl.u32 %v2552_v42, 16 }
  0x3f   : > { %v2634_v27 = vor.u32 %v646_v54, %v643_v52  ;;  %v396_v17 = vshll.u32 %v354_v60, 16  ;;  %v620_v52 = vunpack.c.l.b16 %v276_v31 }
  0x40   : > { %577 = vrot.lane.b32.xlu1 %v568_v61, %s2337_s28  ;;  %v341_v61 = vsel %vm330_vm0, %v338_v58, %v340_v56  ;;  %v394_v58 = vor.u32 %v392_v5, %v2479_v62  ;;  %v479_v62 = vsel %vm330_vm0, %v476_v39, %v478_v40  ;;  %v519_v39 = vor.u32 %v517_v30, %v2581_v6 }
  0x41   : > { %v648_v47 = vsel %vm622_vm3, %v2447_v43, %v2634_v27  ;;  %v398_v1 = vrot.slane %v396_v17, 1  ;;  %v556_v43 = vunpack.c.l.b16 %v272_v48  ;;  %v621_v55 = vpack.c.b16 %v620_v52, %v620_v52 }
  0x42   : > { %v657_v35 = vsel %vm622_vm3, %v2634_v27, %v2584_v15 }
  0x43   : > { %543 = vrot.lane.b32.xlu2 %v516_v13, %s2340_s6  ;;  %v399_v13 = vsel %vm355_vm4, %v394_v58, %v398_v1  ;;  %v562_v25 = vpack.c.b16 %v556_v43, %v556_v43  ;;  %v671_v6 = vshll.u32 %v621_v55, 16 }
  0x45   : > { %581 = vrot.lane.b32.xlu0 %v572_v12, %s2337_s28  ;;  %v383_v12 = vsel %vm355_vm4, %v378_v10, %v2464_v53  ;;  %v573_v53 = vrot.slane %v562_v25, 1 }
  0x47   : > { %v574_v29 = vsel %vm563_vm2, %v571_v2, %v573_v53  ;;  %v668_v2 = vshrl.u32 %v621_v55, 16 }
  0x48   : > { %682 = vrot.lane.b32.xlu1 %v666_v21, %s2338_s29  ;;  %v495_v21 = vunpack.c.l.b16 %v269_v4 }
  0x4a   : > { %v496_v26 = vpack.c.b16 %v495_v21, %v495_v21 }
  0x4b   : > { %615 = vrot.lane.b32.xlu2 %v606_v51, %s2336_s27  ;;  %v275_v51 = vld [vmem:[%s2391_s23 + $0x5c] sm:$0x7] }
  0x4c   : > { %v537_v50 = vshll.u32 %v496_v26, 16  ;;  %v590_v40 = vunpack.c.l.b16 %v275_v51 }
  0x4d   : > { %611 = vrot.lane.b32.xlu0 %v602_v49, %s2336_s27  ;;  %v533_v49 = vshrl.u32 %v2507_v18, 16 }
  0x4e   : > { %v539_v41 = vrot.slane %v537_v50, 1  ;;  %v596_v54 = vpack.c.b16 %v590_v40, %v590_v40 }
  0x4f   : > { %v535_v32 = vor.u32 %v533_v49, %v2522_v28  ;;  %v604_v28 = vsel %vm597_vm1, %v601_v22, %v603_v7  ;;  %v670_v22 = vrot.slane %v668_v2, 1  ;;  %v673_v7 = vrot.slane %v671_v6, 2 }
  0x50   : > { %346 = vrot.lane.b32.xlu1 %v337_v11, %s2334_s25 }
  0x51   : > { %v540_v37 = vsel %vm355_vm4, %v535_v32, %v539_v41 }
  0x53   : > { %678 = vrot.lane.b32.xlu2 %v648_v47, %s2338_s29 }
  0x55   : > { %350 = vrot.lane.b32.xlu0 %v341_v61, %s2334_s25  ;;  %v674_v61 = vor.u32 %v673_v7, %v670_v22 }
  0x57   : > { %v675_v36 = vsel %vm622_vm3, %v2586_v46, %v674_v61  ;;  %vm858_vm3 = vcmask 59392  }
  0x58   : > { %443 = vrot.lane.b32.xlu1 %v2507_v18, %s2333_s24  ;;  %v524_v18 = vsel %vm355_vm4, %v519_v39, %v2513_v23  ;;  %v778_v23 = vld [vmem:[%s3277_s1 + $0x10] sm:$0x3] }
  0x59   : > { %v792_v56 = vunpack.c.l.b16 %v778_v23 }
  0x5b   : > { %408 = vrot.lane.b32.xlu2 %v399_v13, %s2339_s30  ;;  %v795_v11 = vpack.c.b16 %v792_v56, %v792_v56 }
  0x5d   : > { %404 = vrot.lane.b32.xlu0 %v383_v12, %s2339_s30  ;;  %v811_v60 = vsel %vm809_vm5, %v795_v11, 0 }
  0x5e   : > { %818 = vmatpush.bf16.msra.mxu0 %v811_v60  ;;  %2091 = vmatpush.bf16.msra.mxu3 %v811_v60 }
  0x60   : > { %488 = vrot.lane.b32.xlu1 %v479_v62, %s2335_s26 }
  0x62   : > { %819 = vmatpush.bf16.msra.mxu0 %v1980_v19  ;;  %2092 = vmatpush.bf16.msra.mxu3 %v1980_v19 }
  0x63   : > { %439 = vrot.lane.b32.xlu2 %v2552_v42, %s2333_s24  ;;  %v607_v42 = vrot.slane %v596_v54, 3 }
  0x65   : > { %492 = vrot.lane.b32.xlu0 %v483_v38, %s2335_s26  ;;  %v608_v16 = vsel %vm597_vm1, %v605_v24, %v607_v42 }
  0x66   : > { %820 = vmatpush.bf16.msra.mxu0 %v1979_v45  ;;  %2093 = vmatpush.bf16.msra.mxu3 %v1979_v45 }
  0x68   : > { %583 = vrot.lane.b32.xlu1 %v574_v29, %s2337_s28 }
  0x6b   : > { %549 = vrot.lane.b32.xlu2 %v540_v37, %s2340_s6 }
  0x6d   : > { %545 = vrot.lane.b32.xlu0 %v524_v18, %s2340_s6 }
  0x70   : > { %613 = vrot.lane.b32.xlu1 %v604_v28, %s2336_s27 }
  0x73   : > { %579 = vrot.lane.b32.xlu2 %v570_v9, %s2337_s28 }
  0x75   : > { %617 = vrot.lane.b32.xlu0 %v608_v16, %s2336_s27  ;;  %v576_v24 = vpop.permute.xlu2 %575 }
  0x7b   : > { %684 = vrot.lane.b32.xlu2 %v675_v36, %s2338_s29 }
  0x7d   : > { %680 = vrot.lane.b32.xlu0 %v657_v35, %s2338_s29  ;;  %v349_v59 = vpop.permute.xlu2 %348 }
  0x7e   : > { %v694_v30 = vsel %vm686_vm6, %v2438_v34, %v349_v59 }
  0x82   : > { %v436_v8 = vpop.permute.xlu1 %435 }
  0x85   : > { %v542_v5 = vpop.permute.xlu2 %541 }
  0x87   : > { %v343_v47 = vpop.permute.xlu0 %342 }
  0x88   : > { %v688_v46 = vsel %vm686_vm6, %v2421_v20, %v343_v47  ;;  %v863_v47 = vlaneseq }
  0x8a   : > { %v485_v17 = vpop.permute.xlu1 %484 }
  0x8d   : > { %v403_v15 = vpop.permute.xlu2 %402 }
  0x8f   : > { %v610_v57 = vpop.permute.xlu0 %609 }
  0x92   : > { %v677_v27 = vpop.permute.xlu1 %676 }
  0x95   : > { %v491_v63 = vpop.permute.xlu2 %490 }
  0x97   : > { %v401_v10 = vpop.permute.xlu0 %400 }
  0x98   : > { %v699_v48 = vsel %vm697_vm7, %v688_v46, %v401_v10 }
  0x99   : > { %v710_v58 = vsel %vm708_vm8, %v699_v48, %v436_v8 }
  0x9a   : > { %v721_v1 = vsel %vm719_vm9, %v710_v58, %v485_v17  ;;  %v407_v43 = vpop.permute.xlu1 %406 }
  0x9b   : > { %v732_v4 = vsel %vm730_vm10, %v721_v1, %v542_v5  ;;  %v705_v38 = vsel %vm697_vm7, %v694_v30, %v407_v43  ;;  %v2755_v5 = vshrl.u32 %v863_v47, 7 }
  0x9c   : > { %v743_v12 = vsel %vm741_vm11, %v732_v4, %v576_v24 }
  0x9d   : > { %v754_v20 = vsel %vm752_vm12, %v743_v12, %v610_v57  ;;  %v544_v21 = vpop.permute.xlu2 %543  ;;  %v877_v46 = vand.u32 65535, %v2755_v5  ;;  %v878_v48 = vshrl.u32 %v2755_v5, 16 }
  0x9e   : > { %v765_v14 = vsel %vm763_vm13, %v754_v20, %v677_v27 }
  0x9f   : > { %1939 = vmatmul.msk.bf16.vlgmr.msra.gmra.mxu0 %vm798_vm14, %v765_v14  ;;  %v345_v13 = vpop.permute.xlu0 %344  ;;  %v881_v58 = vmul.u32 52428, %v877_v46  ;;  %v882_v12 = vmul.u32 52429, %v878_v48  ;;  %v880_v20 = vmul.u32 52429, %v877_v46 }
  0xa0   : > { %v690_v31 = vsel %vm686_vm6, %v2435_v33, %v345_v13 }
  0xa1   : > { %v701_v41 = vsel %vm697_vm7, %v690_v31, %v403_v15  ;;  %v884_v14 = vshll.u32 %v881_v58, 16 }
  0xa2   : > { %v438_v25 = vpop.permute.xlu1 %437 }
  0xa3   : > { %v712_v34 = vsel %vm708_vm8, %v701_v41, %v438_v25  ;;  %vm888_vm15 = vc.u32 %v880_v20, %v884_v14  ;;  %v890_v30 = vadd.s32 %v884_v14, %v880_v20 }
  0xa5   : > { %v616_v3 = vpop.permute.xlu2 %615 }
  0xa7   : > { %v442_v62 = vpop.permute.xlu0 %441 }
  0xa8   : > { %v716_v49 = vsel %vm708_vm8, %v705_v38, %v442_v62 }
  0xa9   : > { %v727_v29 = vsel %vm719_vm9, %v716_v49, %v491_v63 }
  0xaa   : > { %v548_v26 = vpop.permute.xlu1 %547 }
  0xab   : > { %v738_v39 = vsel %vm730_vm10, %v727_v29, %v548_v26  ;;  %v886_v26 = vshll.u32 %v882_v12, 16 }
  0xad   : > { %v679_v51 = vpop.permute.xlu2 %678  ;;  %vm892_vm0 = vc.u32 %v890_v30, %v886_v26 }
  0xaf   : > { %v487_v53 = vpop.permute.xlu0 %486 }
  0xb0   : > { %v723_v52 = vsel %vm719_vm9, %v712_v34, %v487_v53 }
  0xb1   : > { %v734_v33 = vsel %vm730_vm10, %v723_v52, %v544_v21  ;;  %v2770_v21 = vadd.s32 8, %v2755_v5 }
  0xb2   : > { %v578_v50 = vpop.permute.xlu1 %577 }
  0xb3   : > { %v745_v28 = vsel %vm741_vm11, %v734_v33, %v578_v50  ;;  %v906_v53 = vand.u32 65535, %v2770_v21  ;;  %v907_v38 = vshrl.u32 %v2770_v21, 16  ;;  %v883_v50 = vmul.u32 52428, %v878_v48 }
  0xb4   : > { %v2809_v48 = vadd.s32 56, %v2755_v5 }
  0xb5   : > { %v409_v55 = vpop.permute.xlu2 %408  ;;  %v910_v49 = vmul.u32 52428, %v906_v53  ;;  %v909_v29 = vmul.u32 52429, %v906_v53 }
  0xb7   : > { %v582_v40 = vpop.permute.xlu0 %581 }
  0xb8   : > { %v749_v32 = vsel %vm741_vm11, %v738_v39, %v582_v40  ;;  %v911_v39 = vmul.u32 52429, %v907_v38  ;;  %v913_v40 = vshll.u32 %v910_v49, 16 }
  0xb9   : > { %v760_v18 = vsel %vm752_vm12, %v749_v32, %v616_v3 }
  0xba   : > { %v683_v54 = vpop.permute.xlu1 %682  ;;  %v915_v34 = vshll.u32 %v911_v39, 16  ;;  %vm917_vm1 = vc.u32 %v909_v29, %v913_v40  ;;  %v919_v52 = vadd.s32 %v913_v40, %v909_v29 }
  0xbb   : > { %v771_v37 = vsel %vm763_vm13, %v760_v18, %v683_v54  ;;  %v912_v18 = vmul.u32 52428, %v907_v38  ;;  %v885_v54 = vshrl.u32 %v881_v58, 16 }
  0xbc   : > { %1942 = vmatmul.msk.bf16.vlgmr.msra.gmra.mxu3 %vm798_vm14, %v771_v37  ;;  %vm921_vm2 = vc.u32 %v919_v52, %v915_v34 }
  0xbd   : > { %v440_v11 = vpop.permute.xlu2 %439 }
  0xbf   : > { %v612_v42 = vpop.permute.xlu0 %611 }
  0xc0   : > { %v756_v2 = vsel %vm752_vm12, %v745_v28, %v612_v42  ;;  %v887_v28 = vshrl.u32 %v882_v12, 16 }
  0xc1   : > { %v767_v6 = vsel %vm763_vm13, %v756_v2, %v679_v51  ;;  %v2341_v51 = vmov 0  }
  0xc2   : > { %1940 = vmatmul.msk.bf16.gmra.mxu0 %vm798_vm14, %v767_v6  ;;  %v347_v23 = vpop.permute.xlu1 %346  ;;  %v889_v31 = vsel %vm888_vm15, 1, %v2341_v51  ;;  %v893_v41 = vsel %vm892_vm0, 1, %v2341_v51  ;;  %v918_v33 = vsel %vm917_vm1, 1, %v2341_v51  ;;  %v922_v2 = vsel %vm921_vm2, 1, %v2341_v51 }
  0xc3   : > { %v692_v59 = vsel %vm686_vm6, %v2498_v0, %v347_v23  ;;  %v891_v32 = vadd.s32 %v889_v31, %v883_v50  ;;  %v914_v6 = vshrl.u32 %v910_v49, 16  ;;  %v1081_v50 = vshrl.u32 %v2809_v48, 16  ;;  %v2837_v31 = vld [vmem:[%s3278_s2] ss:$0 sm:$0xff] }
  0xc5   : > { %v550_v22 = vpop.permute.xlu2 %549  ;;  %v895_v37 = vadd.s32 %v893_v41, %v891_v32 }
  0xc7   : > { %v351_v56 = vpop.permute.xlu0 %350  ;;  %v896_v42 = vadd.s32 %v895_v37, %v885_v54 }
  0xc8   : > { %v696_v19 = vsel %vm686_vm6, %v2450_v44, %v351_v56  ;;  %v2342_v56 = vmov 0.0  }
  0xc9   : > { %v707_v35 = vsel %vm697_vm7, %v696_v19, %v409_v55  ;;  %v920_v55 = vadd.s32 %v918_v33, %v912_v18  ;;  %857 = vst.msk [vmem:[#allocation2] sm:$0xff] %vm697_vm7, %v2342_v56  ;;  %v2848_v18 = vmul.u32 52429, %v1081_v50 }
  0xca   : > { %v444_v16 = vpop.permute.xlu1 %443  ;;  %859 = vst.msk [vmem:[#allocation2 + $0x8] sm:$0x7] %vm858_vm3, %v2342_v56 }
  0xcb   : > { %v718_v36 = vsel %vm708_vm8, %v707_v35, %v444_v16  ;;  %v924_v23 = vadd.s32 %v922_v2, %v920_v55  ;;  %860 = vst.msk [vmem:[#allocation2 + $0x5b] sm:$0xff] %vm697_vm7, %v2342_v56  ;;  %v916_v16 = vshrl.u32 %v911_v39, 16 }
  0xcc   : > { %861 = vst.msk [vmem:[#allocation2 + $0x63] sm:$0xff] %vm697_vm7, %v2342_v56 }
  0xcd   : > { %v580_v61 = vpop.permute.xlu2 %579 }
  0xcf   : > { %v405_v9 = vpop.permute.xlu0 %404 }
  0xd0   : > { %v703_v17 = vsel %vm697_vm7, %v692_v59, %v405_v9  ;;  %v925_v9 = vadd.s32 %v924_v23, %v914_v6 }
  0xd1   : > { %v714_v63 = vsel %vm708_vm8, %v703_v17, %v440_v11  ;;  %v897_v11 = vadd.s32 %v896_v42, %v887_v28 }
  0xd2   : > { %v489_v60 = vpop.permute.xlu1 %488 }
  0xd3   : > { %v725_v1 = vsel %vm719_vm9, %v714_v63, %v489_v60  ;;  %v2788_v60 = vadd.s32 48, %v2755_v5 }
  0xd5   : > { %v685_v15 = vpop.permute.xlu2 %684  ;;  %v1051_v35 = vand.u32 65535, %v2788_v60  ;;  %v1052_v59 = vshrl.u32 %v2788_v60, 16 }
  0xd7   : > { %v493_v7 = vpop.permute.xlu0 %492  ;;  %v2802_v46 = vmul.u32 52429, %v1052_v59 }
  0xd8   : > { %v729_v8 = vsel %vm719_vm9, %v718_v36, %v493_v7  ;;  %v2785_v7 = vadd.s32 16, %v2755_v5 }
  0xd9   : > { %v740_v57 = vsel %vm730_vm10, %v729_v8, %v550_v22  ;;  %v898_v22 = vshrl.u32 %v897_v11, 3  ;;  %v2796_v8 = vmul.u32 52428, %v1051_v35 }
  0xda   : > { %v584_v45 = vpop.permute.xlu1 %583  ;;  %v935_v19 = vand.u32 65535, %v2785_v7  ;;  %v936_v36 = vshrl.u32 %v2785_v7, 16 }
  0xdb   : > { %v751_v44 = vsel %vm741_vm11, %v740_v57, %v584_v45 }
  0xdc   : > { %v2793_v45 = vmul.u32 52428, %v935_v19  ;;  %v938_v57 = vmul.u32 52429, %v935_v19  ;;  %v1059_v19 = vshrl.u32 %v2796_v8, 16 }
  0xdf   : > { %v546_v24 = vpop.permute.xlu0 %545 }
  0xe0   : > { %v736_v4 = vsel %vm730_vm10, %v725_v1, %v546_v24  ;;  %v899_v24 = vmul.u32 10, %v898_v22 }
  0xe1   : > { %v747_v13 = vsel %vm741_vm11, %v736_v4, %v580_v61  ;;  %v926_v61 = vadd.s32 %v925_v9, %v916_v16  ;;  %v1060_v4 = vshll.u32 %v2802_v46, 16  ;;  %v943_v9 = vshrl.u32 %v2793_v45, 16 }
  0xe2   : > { %v614_v43 = vpop.permute.xlu1 %613  ;;  %v900_v17 = vsub.s32 %v2755_v5, %v899_v24  ;;  %v2898_v16 = vadd.s32 32, %v2755_v5 }
  0xe3   : > { %v758_v25 = vsel %vm752_vm12, %v747_v13, %v614_v43  ;;  %v927_v47 = vshrl.u32 %v926_v61, 3  ;;  %v1089_v61 = vshll.u32 %v2848_v18, 16 }
  0xe4   : > { %vm1164_vm4 = vcmp.ne.s32.totalorder %v900_v17, 0  ;;  %vm1174_vm5 = vcmp.lt.s32.totalorder %v900_v17, 0  ;;  %v1194_v14 = vadd.s32 10, %v900_v17 }
  0xe5   : > { %v928_v63 = vmul.u32 10, %v927_v47  ;;  %vm2820_vm10 = vmand %vm1174_vm5, %vm1164_vm4 }
  0xe6   : > { %v1204_v32 = vsel %vm2820_vm10, %v1194_v14, %v900_v17  ;;  %v1264_v14 = vld [vmem:[#allocation2 + $0x2] sm:$0xff] }
  0xe7   : > { %v618_v27 = vpop.permute.xlu0 %617  ;;  %v2816_v13 = vsub.s32 %v2770_v21, %v928_v63  ;;  %v1057_v21 = vmul.u32 52428, %v1052_v59  ;;  %vm1214_vm2 = vcmp.lt.s32.totalorder %v1204_v32, 8 }
  0xe8   : > { %v762_v10 = vsel %vm752_vm12, %v751_v44, %v618_v27  ;;  %v942_v44 = vshll.u32 %v2793_v45, 16  ;;  %v1054_v27 = vmul.u32 52429, %v1051_v35 }
  0xe9   : > { %v773_v0 = vsel %vm763_vm13, %v762_v10, %v685_v15  ;;  %v2799_v15 = vmul.u32 52429, %v936_v36  ;;  %v1058_v10 = vshll.u32 %v2796_v8, 16  ;;  %vm1165_vm15 = vcmp.ne.s32.totalorder %v2816_v13, 0 }
  0xea   : > { %1943 = vmatmul.msk.bf16.gmra.mxu3 %vm798_vm14, %v773_v0  ;;  %v2806_v0 = vadd.s32 24, %v2755_v5  ;;  %vm946_vm6 = vc.u32 %v938_v57, %v942_v44  ;;  %v948_v1 = vadd.s32 %v942_v44, %v938_v57  ;;  %vm1175_vm0 = vcmp.lt.s32.totalorder %v2816_v13, 0 }
  0xeb   : > { %v944_v58 = vshll.u32 %v2799_v15, 16  ;;  %v1064_v43 = vadd.s32 %v1058_v10, %v1054_v27  ;;  %vm1062_vm8 = vc.u32 %v1054_v27, %v1058_v10  ;;  %v947_v38 = vsel %vm946_vm6, 1, %v2341_v51  ;;  %vm2862_vm4 = vmand %vm1175_vm0, %vm1165_vm15 }
  0xec   : > { %v964_v12 = vand.u32 65535, %v2806_v0  ;;  %v965_v20 = vshrl.u32 %v2806_v0, 16  ;;  %v1063_v29 = vsel %vm1062_vm8, 1, %v2341_v51  ;;  %v1195_v56 = vadd.s32 10, %v2816_v13 }
  0xed   : > { %vm2829_vm12 = vc.u32 %v948_v1, %v944_v58  ;;  %v1065_v33 = vadd.s32 %v1063_v29, %v1057_v21  ;;  %v945_v45 = vshrl.u32 %v2799_v15, 16  ;;  %v1061_v10 = vshrl.u32 %v2802_v46, 16  ;;  %v1254_v15 = vld [vmem:[#allocation2 + $0x1] sm:$0xff] }
  0xee   : > { %v967_v26 = vmul.u32 52429, %v964_v12  ;;  %v2824_v53 = vmul.u32 52428, %v964_v12  ;;  %v2826_v30 = vmul.u32 52429, %v965_v20  ;;  %v951_v37 = vsel %vm2829_vm12, 1, %v2341_v51 }
  0xef   : > { %v681_v62 = vpop.permute.xlu0 %680  ;;  %v970_v28 = vmul.u32 52428, %v965_v20  ;;  %v1205_v57 = vsel %vm2862_vm4, %v1195_v56, %v2816_v13  ;;  %v2894_v56 = vadd.s32 64, %v2755_v5 }
  0xf0   : > { %v769_v3 = vsel %vm763_vm13, %v758_v25, %v681_v62  ;;  %v1080_v25 = vand.u32 65535, %v2809_v48  ;;  %v971_v39 = vshll.u32 %v2824_v53, 16  ;;  %v973_v41 = vshll.u32 %v2826_v30, 16 }
  0xf1   : > { %1941 = vmatmul.msk.bf16.gmra.mxu0 %vm798_vm14, %v769_v3  ;;  %v941_v3 = vmul.u32 52428, %v936_v36  ;;  %vm1066_vm14 = vc.u32 %v1064_v43, %v1060_v4  ;;  %v1086_v36 = vmul.u32 52428, %v1081_v50  ;;  %v972_v58 = vshrl.u32 %v2824_v53, 16 }
  0xf2   : > { %v2841_v40 = vmul.u32 52428, %v1080_v25  ;;  %vm975_vm1 = vc.u32 %v967_v26, %v971_v39  ;;  %v977_v52 = vadd.s32 %v971_v39, %v967_v26  ;;  %v1067_v55 = vsel %vm1066_vm14, 1, %v2341_v51 }
  0xf3   : > { %v949_v34 = vadd.s32 %v947_v38, %v941_v3  ;;  %v976_v2 = vsel %vm975_vm1, 1, %v2341_v51  ;;  %v1083_v6 = vmul.u32 52429, %v1080_v25  ;;  %v1069_v24 = vadd.s32 %v1067_v55, %v1065_v33 }
  0xf4   : > { %v1087_v23 = vshll.u32 %v2841_v40, 16  ;;  %vm979_vm3 = vc.u32 %v977_v52, %v973_v41  ;;  %v978_v35 = vadd.s32 %v976_v2, %v970_v28  ;;  %vm1215_vm8 = vcmp.lt.s32.totalorder %v1205_v57, 8 }
  0xf5   : > { %v953_v22 = vadd.s32 %v951_v37, %v949_v34  ;;  %v980_v47 = vsel %vm979_vm3, 1, %v2341_v51  ;;  %v1070_v63 = vadd.s32 %v1069_v24, %v1059_v19  ;;  %v974_v62 = vshrl.u32 %v2826_v30, 16 }
  0xf6   : > { %vm1091_vm5 = vc.u32 %v1083_v6, %v1087_v23  ;;  %v1093_v17 = vadd.s32 %v1087_v23, %v1083_v6  ;;  %v982_v1 = vadd.s32 %v980_v47, %v978_v35  ;;  %v1088_v53 = vshrl.u32 %v2841_v40, 16 }
  0xf7   : > { %v954_v44 = vadd.s32 %v953_v22, %v943_v9  ;;  %v1092_v27 = vsel %vm1091_vm5, 1, %v2341_v51  ;;  %v1071_v25 = vadd.s32 %v1070_v63, %v1061_v10  ;;  %v1090_v30 = vshrl.u32 %v2848_v18, 16 }
  0xf8   : > { %vm1095_vm6 = vc.u32 %v1093_v17, %v1089_v61  ;;  %v1094_v43 = vadd.s32 %v1092_v27, %v1086_v36  ;;  %v983_v3 = vadd.s32 %v982_v1, %v972_v58  ;;  %v1109_v22 = vand.u32 65535, %v2894_v56 }
  0xf9   : > { %v1096_v12 = vsel %vm1095_vm6, 1, %v2341_v51  ;;  %v955_v13 = vadd.s32 %v954_v44, %v945_v45  ;;  %v1072_v39 = vshrl.u32 %v1071_v25, 3  ;;  %v993_v19 = vand.u32 65535, %v2898_v16 }
  0xfa   : > { %v1098_v49 = vadd.s32 %v1096_v12, %v1094_v43  ;;  %v984_v32 = vadd.s32 %v983_v3, %v974_v62  ;;  %v2911_v35 = vmul.u32 52428, %v1109_v22  ;;  %v994_v36 = vshrl.u32 %v2898_v16, 16 }
  0xfb   : > { %v956_v29 = vshrl.u32 %v955_v13, 3  ;;  %v1073_v52 = vmul.u32 10, %v1072_v39  ;;  %v1112_v10 = vmul.u32 52429, %v1109_v22  ;;  %v996_v43 = vmul.u32 52429, %v993_v19 }
  0xfc   : > { %v1099_v41 = vadd.s32 %v1098_v49, %v1088_v53  ;;  %v1116_v63 = vshll.u32 %v2911_v35, 16  ;;  %v2928_v58 = vmul.u32 52429, %v994_v36 }
  0xfd   : > { %v957_v34 = vmul.u32 10, %v956_v29  ;;  %v1074_v18 = vsub.s32 %v2788_v60, %v1073_v52  ;;  %v1117_v60 = vshrl.u32 %v2911_v35, 16 }
  0xfe   : > { %v1100_v55 = vadd.s32 %v1099_v41, %v1090_v30 }
  0xff   : > { %v958_v2 = vsub.s32 %v2785_v7, %v957_v34  ;;  %vm1170_vm14 = vcmp.ne.s32.totalorder %v1074_v18, 0  ;;  %vm1180_vm15 = vcmp.lt.s32.totalorder %v1074_v18, 0  ;;  %v1200_v61 = vadd.s32 10, %v1074_v18 }
 0x100   : > { %v1101_v23 = vshrl.u32 %v1100_v55, 3  ;;  %vm2906_vm1 = vmand %vm1180_vm15, %vm1170_vm14 }
 0x101   : > { %vm1166_vm10 = vcmp.ne.s32.totalorder %v958_v2, 0  ;;  %vm1176_vm12 = vcmp.lt.s32.totalorder %v958_v2, 0  ;;  %v1196_v7 = vadd.s32 10, %v958_v2  ;;  %v1210_v57 = vsel %vm2906_vm1, %v1200_v61, %v1074_v18 }
 0x102   : > { %v1102_v9 = vmul.u32 10, %v1101_v23  ;;  %vm2901_vm0 = vmand %vm1176_vm12, %vm1166_vm10  ;;  %vm2937_vm6 = vcmp.lt.s32.totalorder %v1210_v57, 8  ;;  %vm1120_vm12 = vc.u32 %v1112_v10, %v1116_v63  ;;  %v2975_v23 = vadd.s32 40, %v2755_v5 }
 0x103   : > { %v1206_v47 = vsel %vm2901_vm0, %v1196_v7, %v958_v2 }
 0x104   : > { %v1103_v17 = vsub.s32 %v2809_v48, %v1102_v9  ;;  %vm2931_vm5 = vcmp.lt.s32.totalorder %v1206_v47, 8  ;;  %v1022_v35 = vand.u32 65535, %v2975_v23 }
 0x106   : > { %vm1181_vm10 = vcmp.lt.s32.totalorder %v1103_v17, 0  ;;  %v1201_v25 = vadd.s32 10, %v1103_v17 }
 0x11c   : > { %v822_v54 = vpop.f32.mrf.mxu0 }
 0x11d   : > { %v823_v42 = vadd.f32 %v2837_v31, %v822_v54  ;;  %v985_v54 = vshrl.u32 %v984_v32, 3  ;;  %v1121_v32 = vsel %vm1120_vm12, 1, %v2341_v51 }
 0x11f   : > { %v847_v11 = vmax.f32 %v823_v42, 0.0  ;;  %v986_v6 = vmul.u32 10, %v985_v54  ;;  %v999_v54 = vmul.u32 52428, %v994_v36 }
 0x121   : > { %v1224_v59 = vsel %vm1214_vm2, %v847_v11, 0.0  ;;  %v987_v11 = vsub.s32 %v2806_v0, %v986_v6  ;;  %v1110_v0 = vshrl.u32 %v2894_v56, 16 }
 0x122   : > { %1234 = vst.msk [vmem:[#allocation2 + $0xb] sm:$0xff] %vm697_vm7, %v1224_v59  ;;  %v2914_v59 = vmul.u32 52428, %v993_v19 }
 0x123   : > { %vm1167_vm2 = vcmp.ne.s32.totalorder %v987_v11, 0  ;;  %vm1177_vm3 = vcmp.lt.s32.totalorder %v987_v11, 0  ;;  %v1197_v45 = vadd.s32 10, %v987_v11  ;;  %v2921_v44 = vmul.u32 52429, %v1110_v0 }
 0x124   : > { %v824_v8 = vpop.f32.mrf.mxu0  ;;  %vm2923_vm4 = vmand %vm1177_vm3, %vm1167_vm2  ;;  %v1000_v12 = vshll.u32 %v2914_v59, 16  ;;  %v1115_v29 = vmul.u32 52428, %v1110_v0 }
 0x125   : > { %v825_v4 = vadd.f32 %v2837_v31, %v824_v8  ;;  %v1207_v13 = vsel %vm2923_vm4, %v1197_v45, %v987_v11  ;;  %v1118_v62 = vshll.u32 %v2921_v44, 16 }
 0x126   : > { %vm1004_vm15 = vc.u32 %v996_v43, %v1000_v12  ;;  %v1006_v49 = vadd.s32 %v1000_v12, %v996_v43  ;;  %vm2958_vm0 = vcmp.lt.s32.totalorder %v1207_v13, 8  ;;  %v1123_v18 = vadd.s32 %v1121_v32, %v1115_v29 }
 0x127   : > { %v848_v20 = vmax.f32 %v825_v4, 0.0  ;;  %v1025_v12 = vmul.u32 52429, %v1022_v35 }
 0x129   : > { %v1225_v26 = vsel %vm1215_vm8, %v848_v20, 0.0  ;;  %v1265_v46 = vld [vmem:[#allocation2 + $0xa] sm:$0xff]  ;;  %vm1171_vm8 = vcmp.ne.s32.totalorder %v1103_v17, 0 }
 0x12a   : > { %v1255_v38 = vld [vmem:[#allocation2 + $0x9] sm:$0xff]  ;;  %1235 = vst.msk [vmem:[#allocation2 + $0x13] sm:$0xff] %vm697_vm7, %v1225_v26  ;;  %v2128_v21 = vpack.i.bf16 %v1265_v46, %v1264_v14  ;;  %v1122_v26 = vadd.s32 %v1116_v63, %v1112_v10  ;;  %vm2947_vm14 = vmand %vm1181_vm10, %vm1171_vm8  ;;  %v1023_v63 = vshrl.u32 %v2975_v23, 16 }
 0x12b   : > { %v2123_v50 = vpack.i.bf16 %v1255_v38, %v1254_v15  ;;  %v1275_v40 = vld [vmem:[#allocation2 + $0xb] sm:$0xff]  ;;  %v1211_v52 = vsel %vm2947_vm14, %v1201_v25, %v1103_v17 }
 0x12c   : > { %2129 = vrot.lane.b32.xlu2 %v2128_v21, %s2335_s26  ;;  %v2952_v21 = vadd.s32 72, %v2755_v5  ;;  %vm1124_vm1 = vc.u32 %v1122_v26, %v1118_v62  ;;  %vm1221_vm3 = vcmp.lt.s32.totalorder %v1211_v52, 8  ;;  %v1028_v62 = vmul.u32 52428, %v1023_v63 }
 0x12d   : > { %2124 = vrot.lane.b32.xlu1 %v2123_v50, %s2339_s30  ;;  %v1125_v7 = vsel %vm1124_vm1, 1, %v2341_v51 }
 0x12e   : > { %v1138_v30 = vand.u32 65535, %v2952_v21  ;;  %v1139_v41 = vshrl.u32 %v2952_v21, 16  ;;  %v1127_v57 = vadd.s32 %v1125_v7, %v1123_v18 }
 0x130   : > { %v2972_v6 = vmul.u32 52429, %v1139_v41  ;;  %v1144_v45 = vmul.u32 52428, %v1139_v41  ;;  %v1128_v48 = vadd.s32 %v1127_v57, %v1117_v60 }
 0x131   : > { %v2886_v37 = vld [vmem:[#allocation2 + $0x12] sm:$0xff] }
 0x132   : > { %v1276_v33 = vld [vmem:[#allocation2 + $0x13] sm:$0xff]  ;;  %v2133_v28 = vpack.i.bf16 %v2886_v37, %v1265_v46  ;;  %v1002_v46 = vshll.u32 %v2928_v58, 16  ;;  %v1147_v5 = vshll.u32 %v2972_v6, 16  ;;  %v1148_v52 = vshrl.u32 %v2972_v6, 16 }
 0x133   : > { %v2138_v42 = vpack.i.bf16 %v1276_v33, %v1275_v40  ;;  %v1005_v40 = vsel %vm1004_vm15, 1, %v2341_v51 }
 0x134   : > { %2134 = vrot.lane.b32.xlu0 %v2133_v28, %s2337_s28  ;;  %vm1008_vm2 = vc.u32 %v1006_v49, %v1002_v46  ;;  %v1141_v28 = vmul.u32 52429, %v1138_v30  ;;  %v1007_v61 = vadd.s32 %v1005_v40, %v999_v54 }
 0x135   : > { %2139 = vrot.lane.b32.xlu1 %v2138_v42, %s2338_s29  ;;  %v2969_v42 = vmul.u32 52428, %v1138_v30  ;;  %v1009_v19 = vsel %vm1008_vm2, 1, %v2341_v51 }
 0x136   : > { %v1011_v8 = vadd.s32 %v1009_v19, %v1007_v61 }
 0x137   : > { %v1145_v9 = vshll.u32 %v2969_v42, 16 }
 0x139   : > { %vm1149_vm4 = vc.u32 %v1141_v28, %v1145_v9  ;;  %v1151_v36 = vadd.s32 %v1145_v9, %v1141_v28 }
 0x13a   : > { %v1150_v10 = vsel %vm1149_vm4, 1, %v2341_v51 }
 0x13b   : > { %v1152_v43 = vadd.s32 %v1150_v10, %v1144_v45 }
 0x13f   : > { %v827_v27 = vpop.f32.mrf.mxu0  ;;  %v837_v4 = vpop.f32.mrf.mxu3 }
 0x140   : > { %v828_v1 = vadd.f32 %v2837_v31, %v827_v27  ;;  %v838_v20 = vadd.f32 %v2837_v31, %v837_v4  ;;  %v1001_v27 = vshrl.u32 %v2914_v59, 16  ;;  %v1003_v4 = vshrl.u32 %v2928_v58, 16 }
 0x142   : > { %v849_v15 = vmax.f32 %v828_v1, 0.0  ;;  %v853_v3 = vmax.f32 %v838_v20, 0.0  ;;  %v1119_v1 = vshrl.u32 %v2921_v44, 16  ;;  %v1012_v20 = vadd.s32 %v1011_v8, %v1001_v27 }
 0x143   : > { %v1146_v44 = vshrl.u32 %v2969_v42, 16 }
 0x144   : > { %v1226_v38 = vsel %vm2931_vm5, %v849_v15, 0.0  ;;  %v1230_v50 = vsel %vm2937_vm6, %v853_v3, 0.0  ;;  %vm1153_vm5 = vc.u32 %v1151_v36, %v1147_v5  ;;  %v1027_v15 = vmul.u32 52429, %v1023_v63 }
 0x145   : > { %1236 = vst.msk [vmem:[#allocation2 + $0x1b] sm:$0xff] %vm697_vm7, %v1226_v38  ;;  %v1154_v14 = vsel %vm1153_vm5, 1, %v2341_v51  ;;  %v1129_v38 = vadd.s32 %v1128_v48, %v1119_v1  ;;  %v1013_v29 = vadd.s32 %v1012_v20, %v1003_v4 }
 0x146   : > { %1240 = vst.msk [vmem:[#allocation2 + $0x3b] sm:$0xff] %vm697_vm7, %v1230_v50  ;;  %v1031_v53 = vshll.u32 %v1027_v15, 16  ;;  %v1156_v50 = vadd.s32 %v1154_v14, %v1152_v43  ;;  %v1032_v28 = vshrl.u32 %v1027_v15, 16 }
 0x147   : > { %v829_v34 = vpop.f32.mrf.mxu0  ;;  %v839_v55 = vpop.f32.mrf.mxu3 }
 0x148   : > { %v830_v33 = vadd.f32 %v2837_v31, %v829_v34  ;;  %v840_v2 = vadd.f32 %v2837_v31, %v839_v55  ;;  %v1130_v34 = vshrl.u32 %v1129_v38, 3  ;;  %v1157_v54 = vadd.s32 %v1156_v50, %v1146_v44 }
 0x149   : > { %v1014_v55 = vshrl.u32 %v1013_v29, 3 }
 0x14a   : > { %v850_v11 = vmax.f32 %v830_v33, 0.0  ;;  %v854_v22 = vmax.f32 %v840_v2, 0.0  ;;  %v1256_v2 = vld [vmem:[#allocation2 + $0x11] sm:$0xff]  ;;  %v1158_v7 = vadd.s32 %v1157_v54, %v1148_v52 }
 0x14b   : > { %v1015_v9 = vmul.u32 10, %v1014_v55 }
 0x14c   : > { %v1227_v24 = vsel %vm2958_vm0, %v850_v11, 0.0  ;;  %v2983_v0 = vld [vmem:[#allocation2 + $0x1a] sm:$0xff]  ;;  %v1231_v47 = vsel %vm1221_vm3, %v854_v22, 0.0  ;;  %v1131_v11 = vmul.u32 10, %v1130_v34 }
 0x14d   : > { %1237 = vst.msk [vmem:[#allocation2 + $0x23] sm:$0xff] %vm697_vm7, %v1227_v24  ;;  %v2158_v17 = vpack.i.bf16 %v2983_v0, %v2886_v37  ;;  %v1026_v37 = vmul.u32 52428, %v1022_v35  ;;  %v1296_v59 = vld [vmem:[#allocation2 + $0x15] sm:$0xff]  ;;  %v1016_v6 = vsub.s32 %v2898_v16, %v1015_v9  ;;  %v1285_v24 = vld [vmem:[#allocation2 + $0xc] sm:$0xff] }
 0x14e   : > { %1241 = vst.msk [vmem:[#allocation2 + $0x43] sm:$0xff] %vm697_vm7, %v1231_v47  ;;  %v1281_v26 = vld [vmem:[#allocation2 + $0x3b] sm:$0xff]  ;;  %v1132_v60 = vsub.s32 %v2894_v56, %v1131_v11 }
 0x14f   : > { %2159 = vrot.lane.b32.xlu0 %v2158_v17, %s2335_s26  ;;  %v1029_v13 = vshll.u32 %v1026_v37, 16  ;;  %v1030_v32 = vshrl.u32 %v1026_v37, 16  ;;  %v1257_v33 = vld [vmem:[#allocation2 + $0x19] sm:$0xff]  ;;  %vm1168_vm14 = vcmp.ne.s32.totalorder %v1016_v6, 0  ;;  %vm1178_vm15 = vcmp.lt.s32.totalorder %v1016_v6, 0 }
 0x150   : > { %v2148_v18 = vpack.i.bf16 %v1257_v33, %v1256_v2  ;;  %v3006_v61 = vld [vmem:[#allocation2 + $0x14] sm:$0xff]  ;;  %vm1172_vm10 = vcmp.ne.s32.totalorder %v1132_v60, 0  ;;  %vm1182_vm12 = vcmp.lt.s32.totalorder %v1132_v60, 0  ;;  %v1202_v17 = vadd.s32 10, %v1132_v60  ;;  %vm1188_vm1 = vmand %vm1178_vm15, %vm1168_vm14 }
 0x151   : > { %vm1033_vm6 = vc.u32 %v1025_v12, %v1029_v13  ;;  %v1035_v58 = vadd.s32 %v1029_v13, %v1025_v12  ;;  %v2153_v5 = vpack.i.bf16 %v3006_v61, %v1285_v24  ;;  %vm1192_vm0 = vmand %vm1182_vm12, %vm1172_vm10  ;;  %v1198_v56 = vadd.s32 10, %v1016_v6  ;;  %v1277_v11 = vld [vmem:[#allocation2 + $0x1b] sm:$0xff] }
 0x152   : > { %v1034_v39 = vsel %vm1033_vm6, 1, %v2341_v51  ;;  %v1212_v35 = vsel %vm1192_vm0, %v1202_v17, %v1132_v60  ;;  %vm1763_vm0 = vcmask 1043456  }
 0x153   : > { %v1036_v30 = vadd.s32 %v1034_v39, %v1028_v62  ;;  %vm1037_vm8 = vc.u32 %v1035_v58, %v1031_v53  ;;  %v1208_v27 = vsel %vm1188_vm1, %v1198_v56, %v1016_v6  ;;  %vm1222_vm4 = vcmp.lt.s32.totalorder %v1212_v35, 8  ;;  %v1305_v56 = vld [vmem:[#allocation2 + $0x5d] sm:$0xff] }
 0x154   : > { %v1297_v25 = vld [vmem:[#allocation2 + $0x1d] sm:$0xff]  ;;  %v1038_v41 = vsel %vm1037_vm8, 1, %v2341_v51  ;;  %v1159_v51 = vshrl.u32 %v1158_v7, 3  ;;  %vm1218_vm8 = vcmp.lt.s32.totalorder %v1208_v27, 8  ;;  %vm1658_vm1 = vcmask 326656  }
 0x155   : > { %v2183_v3 = vpack.i.bf16 %v1297_v25, %v1296_v59  ;;  %v1282_v46 = vld [vmem:[#allocation2 + $0x43] sm:$0xff]  ;;  %v1040_v40 = vadd.s32 %v1038_v41, %v1036_v30  ;;  %v1306_v30 = vld [vmem:[#allocation2 + $0x16] sm:$0xff] }
 0x156   : > { %v2143_v49 = vpack.i.bf16 %v1282_v46, %v1281_v26  ;;  %v1160_v36 = vmul.u32 10, %v1159_v51  ;;  %v3019_v62 = vld [vmem:[#allocation2 + $0x3c] sm:$0xff] }
 0x157   : > { %2184 = vrot.lane.b32.xlu1 %v2183_v3, %s2343_s15  ;;  %v1041_v42 = vadd.s32 %v1040_v40, %v1030_v32  ;;  %v1262_v46 = vld [vmem:[#allocation2 + $0x41] sm:$0xff] }
 0x158   : > { %2144 = vrot.lane.b32.xlu2 %v2143_v49, %s2338_s29  ;;  %v1161_v57 = vsub.s32 %v2952_v21, %v1160_v36  ;;  %v1307_v50 = vld [vmem:[#allocation2 + $0x1e] sm:$0xff] }
 0x159   : > { %v1042_v22 = vadd.s32 %v1041_v42, %v1032_v28  ;;  %v3026_v29 = vld [vmem:[#allocation2 + $0x42] sm:$0xff]  ;;  %v2188_v41 = vpack.i.bf16 %v1307_v50, %v1306_v30 }
 0x15a   : > { %vm1173_vm2 = vcmp.ne.s32.totalorder %v1161_v57, 0  ;;  %vm1183_vm3 = vcmp.lt.s32.totalorder %v1161_v57, 0  ;;  %v1203_v48 = vadd.s32 10, %v1161_v57  ;;  %v1287_v52 = vld [vmem:[#allocation2 + $0x1c] sm:$0xff] }
 0x15b   : > { %v1043_v19 = vshrl.u32 %v1042_v22, 3  ;;  %vm1193_vm10 = vmand %vm1183_vm3, %vm1173_vm2  ;;  %v1268_v54 = vld [vmem:[#allocation2 + $0x22] sm:$0xff]  ;;  %v2178_v55 = vpack.i.bf16 %v1287_v52, %v3006_v61  ;;  %vm1669_vm2 = vcmask 392192   ;;  %vm1680_vm3 = vcmask 457728  }
 0x15c   : > { %v1213_v43 = vsel %vm1193_vm10, %v1203_v48, %v1161_v57  ;;  %v2193_v28 = vpack.i.bf16 %v1268_v54, %v2983_v0  ;;  %v1278_v2 = vld [vmem:[#allocation2 + $0x23] sm:$0xff] }
 0x15d   : > { %v1044_v47 = vmul.u32 10, %v1043_v19  ;;  %vm1223_vm14 = vcmp.lt.s32.totalorder %v1213_v43, 8  ;;  %v2198_v9 = vpack.i.bf16 %v1278_v2, %v1277_v11  ;;  %v1295_v51 = vld [vmem:[#allocation2 + $0x5c] sm:$0xff] }
 0x15e   : > { %v1258_v57 = vld [vmem:[#allocation2 + $0x21] sm:$0xff] }
 0x15f   : > { %v1045_v16 = vsub.s32 %v2975_v23, %v1044_v47  ;;  %v1301_v2 = vld [vmem:[#allocation2 + $0x3d] sm:$0xff] }
 0x160   : > { %2149 = vrot.lane.b32.xlu2 %v2148_v18, %s2339_s30 }
 0x161   : > { %vm1169_vm5 = vcmp.ne.s32.totalorder %v1045_v16, 0  ;;  %vm1179_vm6 = vcmp.lt.s32.totalorder %v1045_v16, 0  ;;  %v1199_v21 = vadd.s32 10, %v1045_v16 }
 0x162   : > { %vm1189_vm12 = vmand %vm1179_vm6, %vm1169_vm5  ;;  %vm1747_vm5 = vcmask 588800  }
 0x163   : > { %v1209_v20 = vsel %vm1189_vm12, %v1199_v21, %v1045_v16 }
 0x164   : > { %vm1219_vm15 = vcmp.lt.s32.totalorder %v1209_v20, 8 }
 0x168   : > { %2154 = vrot.lane.b32.xlu2 %v2153_v5, %s2344_s16 }
 0x16d   : > { %v842_v45 = vpop.f32.mrf.mxu3 }
 0x16e   : > { %v843_v8 = vadd.f32 %v2837_v31, %v842_v45  ;;  %v832_v10 = vpop.f32.mrf.mxu0 }
 0x16f   : > { %v833_v63 = vadd.f32 %v2837_v31, %v832_v10 }
 0x170   : > { %v855_v1 = vmax.f32 %v843_v8, 0.0 }
 0x171   : > { %v851_v37 = vmax.f32 %v833_v63, 0.0 }
 0x172   : > { %v1232_v23 = vsel %vm1222_vm4, %v855_v1, 0.0  ;;  %vm1691_vm4 = vcmask 523264  }
 0x173   : > { %1242 = vst.msk [vmem:[#allocation2 + $0x4b] sm:$0xff] %vm697_vm7, %v1232_v23  ;;  %v1228_v4 = vsel %vm1218_vm8, %v851_v37, 0.0 }
 0x174   : > { %1238 = vst.msk [vmem:[#allocation2 + $0x2b] sm:$0xff] %vm697_vm7, %v1228_v4 }
 0x175   : > { %v844_v12 = vpop.f32.mrf.mxu3 }
 0x176   : > { %v845_v14 = vadd.f32 %v2837_v31, %v844_v12  ;;  %v834_v15 = vpop.f32.mrf.mxu0 }
 0x177   : > { %v835_v13 = vadd.f32 %v2837_v31, %v834_v15 }
 0x178   : > { %v856_v59 = vmax.f32 %v845_v14, 0.0 }
 0x179   : > { %v852_v25 = vmax.f32 %v835_v13, 0.0  ;;  %v1315_v13 = vld [vmem:[#allocation2 + $0x5e] sm:$0xff] }
 0x17a   : > { %v1233_v3 = vsel %vm1223_vm14, %v856_v59, 0.0  ;;  %v1292_v26 = vld [vmem:[#allocation2 + $0x44] sm:$0xff] }
 0x17b   : > { %v1263_v38 = vld [vmem:[#allocation2 + $0x49] sm:$0xff]  ;;  %1243 = vst.msk [vmem:[#allocation2 + $0x53] sm:$0xff] %vm697_vm7, %v1233_v3  ;;  %v1229_v44 = vsel %vm1219_vm15, %v852_v25, 0.0  ;;  %v2163_v53 = vpack.i.bf16 %v1292_v26, %v3019_v62 }
 0x17c   : > { %v2168_v49 = vpack.i.bf16 %v1263_v38, %v1262_v46  ;;  %1239 = vst.msk [vmem:[#allocation2 + $0x33] sm:$0xff] %vm697_vm7, %v1229_v44  ;;  %v1273_v31 = vld [vmem:[#allocation2 + $0x4a] sm:$0xff] }
 0x17d   : > { %2164 = vrot.lane.b32.xlu0 %v2163_v53, %s2344_s16  ;;  %v2173_v32 = vpack.i.bf16 %v1273_v31, %v3026_v29  ;;  %v1312_v40 = vld [vmem:[#allocation2 + $0x46] sm:$0xff] }
 0x17e   : > { %2169 = vrot.lane.b32.xlu2 %v2168_v49, %s2339_s30  ;;  %v1302_v22 = vld [vmem:[#allocation2 + $0x45] sm:$0xff] }
 0x17f   : > { %v1283_v24 = vld [vmem:[#allocation2 + $0x4b] sm:$0xff] }
 0x180   : > { %v1288_v36 = vld [vmem:[#allocation2 + $0x24] sm:$0xff] }
 0x181   : > { %v1259_v47 = vld [vmem:[#allocation2 + $0x29] sm:$0xff]  ;;  %v2248_v16 = vpack.i.bf16 %v1288_v36, %v1287_v52 }
 0x182   : > { %v1293_v58 = vld [vmem:[#allocation2 + $0x4c] sm:$0xff]  ;;  %v1294_v0 = vld [vmem:[#allocation2 + $0x54] sm:$0xff]  ;;  %v2243_v35 = vpack.i.bf16 %v1259_v47, %v1258_v57 }
 0x183   : > { %v2203_v39 = vpack.i.bf16 %v1293_v58, %v1292_v26  ;;  %v1313_v34 = vld [vmem:[#allocation2 + $0x4e] sm:$0xff]  ;;  %v2233_v6 = vpack.i.bf16 %v1295_v51, %v1294_v0  ;;  %v2228_v19 = vpack.i.bf16 %v1294_v0, %v1293_v58  ;;  %v1261_v8 = vld [vmem:[#allocation2 + $0x39] sm:$0xff]  ;;  %v1298_v26 = vld [vmem:[#allocation2 + $0x25] sm:$0xff] }
 0x184   : > { %v2213_v33 = vpack.i.bf16 %v1313_v34, %v1312_v40  ;;  %v1274_v42 = vld [vmem:[#allocation2 + $0x52] sm:$0xff]  ;;  %v1271_v63 = vld [vmem:[#allocation2 + $0x3a] sm:$0xff]  ;;  %v1269_v4 = vld [vmem:[#allocation2 + $0x2a] sm:$0xff] }
 0x185   : > { %2204 = vrot.lane.b32.xlu1 %v2203_v39, %s2345_s17  ;;  %2174 = vrot.lane.b32.xlu0 %v2173_v32, %s2335_s26  ;;  %v1303_v18 = vld [vmem:[#allocation2 + $0x4d] sm:$0xff]  ;;  %v2218_v7 = vpack.i.bf16 %v1274_v42, %v1273_v31  ;;  %v1304_v17 = vld [vmem:[#allocation2 + $0x55] sm:$0xff]  ;;  %v2268_v12 = vpack.i.bf16 %v3026_v29, %v1271_v63  ;;  %v2263_v20 = vpack.i.bf16 %v1269_v4, %v1268_v54 }
 0x186   : > { %2189 = vrot.lane.b32.xlu2 %v2188_v41, %s2346_s20  ;;  %v2208_v60 = vpack.i.bf16 %v1303_v18, %v1302_v22  ;;  %v1284_v61 = vld [vmem:[#allocation2 + $0x53] sm:$0xff]  ;;  %v2238_v45 = vpack.i.bf16 %v1305_v56, %v1304_v17  ;;  %v3046_v48 = vpop.permute.xlu2 %2129  ;;  %v1308_v34 = vld [vmem:[#allocation2 + $0x26] sm:$0xff]  ;;  %v1311_v22 = vld [vmem:[#allocation2 + $0x3e] sm:$0xff] }
 0x187   : > { %v2223_v5 = vpack.i.bf16 %v1284_v61, %v1283_v24  ;;  %v1260_v27 = vld [vmem:[#allocation2 + $0x31] sm:$0xff] }
 0x188   : > { %v1270_v10 = vld [vmem:[#allocation2 + $0x32] sm:$0xff]  ;;  %v2253_v37 = vpack.i.bf16 %v1261_v8, %v1260_v27  ;;  %v1244_v27 = vld [vmem:[#allocation2] sm:$0xff]  ;;  %v1245_v8 = vld [vmem:[#allocation2 + $0x8] sm:$0xff] }
 0x189   : > { %v1289_v1 = vld [vmem:[#allocation2 + $0x2c] sm:$0xff]  ;;  %v2258_v21 = vpack.i.bf16 %v1271_v63, %v1270_v10  ;;  %v2293_v14 = vpack.i.bf16 %v1270_v10, %v1269_v4  ;;  %v1314_v15 = vld [vmem:[#allocation2 + $0x56] sm:$0xff]  ;;  %v2132_v4 = vunpack.i.h.bf16 %v3046_v48 }
 0x18a   : > { %v2278_v23 = vpack.i.bf16 %v1289_v1, %v1288_v36  ;;  %v1299_v59 = vld [vmem:[#allocation2 + $0x2d] sm:$0xff]  ;;  %v2273_v46 = vpack.i.bf16 %v1315_v13, %v1314_v15  ;;  %v1247_v32 = vld [vmem:[#allocation2 + $0x18] sm:$0xff]  ;;  %v1981_v36 = vld [vmem:[%s3279_s3] sm:$0xff] }
 0x18b   : > { %v1290_v3 = vld [vmem:[#allocation2 + $0x34] sm:$0xff]  ;;  %v2283_v38 = vpack.i.bf16 %v1299_v59, %v1298_v26  ;;  %v1279_v52 = vld [vmem:[#allocation2 + $0x2b] sm:$0xff] }
 0x18c   : > { %v2308_v53 = vpack.i.bf16 %v3019_v62, %v1290_v3  ;;  %v1309_v50 = vld [vmem:[#allocation2 + $0x2e] sm:$0xff]  ;;  %v2303_v18 = vpack.i.bf16 %v1290_v3, %v1289_v1 }
 0x18d   : > { %2214 = vrot.lane.b32.xlu1 %v2213_v33, %s2346_s20  ;;  %2179 = vrot.lane.b32.xlu0 %v2178_v55, %s2345_s17  ;;  %v1280_v58 = vld [vmem:[#allocation2 + $0x33] sm:$0xff]  ;;  %v2288_v40 = vpack.i.bf16 %v1309_v50, %v1308_v34 }
 0x18e   : > { %2194 = vrot.lane.b32.xlu2 %v2193_v28, %s2337_s28  ;;  %v1246_v29 = vld [vmem:[#allocation2 + $0x10] sm:$0xff]  ;;  %v2298_v33 = vpack.i.bf16 %v1280_v58, %v1279_v52 }
 0x18f   : > { %v1300_v42 = vld [vmem:[#allocation2 + $0x35] sm:$0xff] }
 0x190   : > { %v2313_v11 = vpack.i.bf16 %v1301_v2, %v1300_v42 }
 0x195   : > { %2219 = vrot.lane.b32.xlu1 %v2218_v7, %s2337_s28  ;;  %2199 = vrot.lane.b32.xlu0 %v2198_v9, %s2338_s29  ;;  %v1310_v7 = vld [vmem:[#allocation2 + $0x36] sm:$0xff]  ;;  %v1715_v9 = vld [vmem:[%s3279_s3 + $0x20] sm:$0xf] }
 0x196   : > { %2209 = vrot.lane.b32.xlu2 %v2208_v60, %s2343_s15  ;;  %v1737_v60 = vunpack.c.l.b16 %v1715_v9  ;;  %v2318_v0 = vpack.i.bf16 %v1311_v22, %v1310_v7 }
 0x198   : > { %v1742_v51 = vpack.c.b16 %v1737_v60, %v1737_v60 }
 0x19a   : > { %v1765_v61 = vsel %vm1763_vm0, %v1742_v51, 0 }
 0x19b   : > { %1770 = vmatpush.bf16.msra.mxu1 %v1765_v61  ;;  %2094 = vmatpush.bf16.msra.mxu2 %v1765_v61 }
 0x19d   : > { %2234 = vrot.lane.b32.xlu1 %v2233_v6, %s2345_s17  ;;  %2229 = vrot.lane.b32.xlu0 %v2228_v19, %s2344_s16  ;;  %v1984_v6 = vld [vmem:[%s3279_s3 + $0x18] sm:$0xff]  ;;  %v1983_v19 = vld [vmem:[%s3279_s3 + $0x10] sm:$0xff] }
 0x19e   : > { %2224 = vrot.lane.b32.xlu2 %v2223_v5, %s2338_s29  ;;  %v1982_v5 = vld [vmem:[%s3279_s3 + $0x8] sm:$0xff] }
 0x19f   : > { %1771 = vmatpush.bf16.msra.mxu1 %v1984_v6  ;;  %2095 = vmatpush.bf16.msra.mxu2 %v1984_v6  ;;  %v2125_v24 = vpop.permute.xlu1 %2124 }
 0x1a3   : > { %1772 = vmatpush.bf16.msra.mxu1 %v1983_v19  ;;  %2096 = vmatpush.bf16.msra.mxu2 %v1983_v19 }
 0x1a5   : > { %2249 = vrot.lane.b32.xlu1 %v2248_v16, %s2344_s16  ;;  %2244 = vrot.lane.b32.xlu0 %v2243_v35, %s2339_s30  ;;  %v2127_v35 = vunpack.i.h.bf16 %v2125_v24 }
 0x1a6   : > { %2239 = vrot.lane.b32.xlu2 %v2238_v45, %s2343_s15  ;;  %v3057_v25 = vpop.permute.xlu0 %2134  ;;  %v2126_v45 = vunpack.i.l.bf16 %v2125_v24 }
 0x1a7   : > { %1773 = vmatpush.bf16.msra.mxu1 %v1982_v5  ;;  %2097 = vmatpush.bf16.msra.mxu2 %v1982_v5  ;;  %v2140_v47 = vpop.permute.xlu1 %2139 }
 0x1a8   : > { %v1618_v1 = vsel %vm697_vm7, %v1244_v27, %v2126_v45  ;;  %v2141_v15 = vunpack.i.l.bf16 %v2140_v47 }
 0x1ab   : > { %1774 = vmatpush.bf16.msra.mxu1 %v1981_v36  ;;  %2098 = vmatpush.bf16.msra.mxu2 %v1981_v36 }
 0x1ad   : > { %2254 = vrot.lane.b32.xlu1 %v2253_v37, %s2339_s30  ;;  %2259 = vrot.lane.b32.xlu0 %v2258_v21, %s2335_s26  ;;  %v1619_v37 = vsel %vm697_vm7, %v1245_v8, %v2127_v35  ;;  %v2137_v21 = vunpack.i.h.bf16 %v3057_v25  ;;  %v1250_v35 = vld [vmem:[#allocation2 + $0x30] sm:$0xff] }
 0x1ae   : > { %2279 = vrot.lane.b32.xlu2 %v2278_v23, %s2345_s17  ;;  %v2136_v23 = vunpack.i.l.bf16 %v3057_v25  ;;  %v1629_v59 = vsel %vm719_vm9, %v1619_v37, %v2132_v4 }
 0x1af   : > { %v1639_v3 = vsel %vm741_vm11, %v1629_v59, %v2137_v21 }
 0x1b2   : > { %v3051_v43 = vpop.permute.xlu2 %2144 }
 0x1b3   : > { %v2146_v8 = vunpack.i.l.bf16 %v3051_v43 }
 0x1b5   : > { %2269 = vrot.lane.b32.xlu1 %v2268_v12, %s2337_s28  ;;  %2264 = vrot.lane.b32.xlu0 %v2263_v20, %s2335_s26  ;;  %v2131_v12 = vunpack.i.l.bf16 %v3046_v48 }
 0x1b6   : > { %2294 = vrot.lane.b32.xlu2 %v2293_v14, %s2337_s28  ;;  %v2142_v14 = vunpack.i.h.bf16 %v2140_v47  ;;  %v2147_v47 = vunpack.i.h.bf16 %v3051_v43 }
 0x1b7   : > { %v1628_v13 = vsel %vm719_vm9, %v1618_v1, %v2131_v12  ;;  %v1253_v1 = vld [vmem:[#allocation2 + $0x48] sm:$0xff] }
 0x1b8   : > { %v1638_v26 = vsel %vm741_vm11, %v1628_v13, %v2136_v23 }
 0x1b9   : > { %v1648_v25 = vsel %vm763_vm13, %v1638_v26, %v2141_v15 }
 0x1ba   : > { %v2150_v44 = vpop.permute.xlu2 %2149 }
 0x1bb   : > { %v2152_v49 = vunpack.i.h.bf16 %v2150_v44  ;;  %v2151_v31 = vunpack.i.l.bf16 %v2150_v44  ;;  %v1649_v44 = vsel %vm763_vm13, %v1639_v3, %v2142_v14 }
 0x1bd   : > { %2274 = vrot.lane.b32.xlu1 %v2273_v46, %s2346_s20  ;;  %2284 = vrot.lane.b32.xlu0 %v2283_v38, %s2343_s15  ;;  %v1620_v54 = vsel %vm697_vm7, %v1246_v29, %v2151_v31  ;;  %v1621_v62 = vsel %vm697_vm7, %v1247_v32, %v2152_v49 }
 0x1be   : > { %2309 = vrot.lane.b32.xlu2 %v2308_v53, %s2345_s17 }
 0x1c1   : > { %v2160_v39 = vpop.permute.xlu0 %2159 }
 0x1c2   : > { %v2162_v30 = vunpack.i.h.bf16 %v2160_v39  ;;  %v2161_v41 = vunpack.i.l.bf16 %v2160_v39  ;;  %v2155_v17 = vpop.permute.xlu2 %2154 }
 0x1c3   : > { %v2156_v46 = vunpack.i.l.bf16 %v2155_v17  ;;  %v2157_v38 = vunpack.i.h.bf16 %v2155_v17  ;;  %v1252_v17 = vld [vmem:[#allocation2 + $0x40] sm:$0xff] }
 0x1c4   : > { %v3066_v55 = vsel %vm719_vm9, %v1621_v62, %v2162_v30  ;;  %v3069_v28 = vsel %vm719_vm9, %v1620_v54, %v2161_v41 }
 0x1c5   : > { %2289 = vrot.lane.b32.xlu1 %v2288_v40, %s2346_s20  ;;  %2299 = vrot.lane.b32.xlu0 %v2298_v33, %s2338_s29  ;;  %v1659_v49 = vsel %vm1658_vm1, %v1648_v25, %v2156_v46  ;;  %v1660_v58 = vsel %vm1658_vm1, %v1649_v44, %v2157_v38 }
 0x1c9   : > { %v2185_v56 = vpop.permute.xlu1 %2184 }
 0x1ca   : > { %v2187_v29 = vunpack.i.h.bf16 %v2185_v56  ;;  %v2186_v39 = vunpack.i.l.bf16 %v2185_v56  ;;  %v1251_v56 = vld [vmem:[#allocation2 + $0x38] sm:$0xff] }
 0x1cd   : > { %2304 = vrot.lane.b32.xlu1 %v2303_v18, %s2344_s16  ;;  %2314 = vrot.lane.b32.xlu0 %v2313_v11, %s2343_s15 }
 0x1d5   : > { %2319 = vrot.lane.b32.xlu1 %v2318_v0, %s2346_s20 }
 0x1d8   : > { %v3093_v16 = vpop.permute.xlu2 %2169 }
 0x1d9   : > { %v2171_v6 = vunpack.i.l.bf16 %v3093_v16  ;;  %v2172_v5 = vunpack.i.h.bf16 %v3093_v16 }
 0x1db   : > { %v1626_v37 = vsel %vm697_vm7, %v1252_v17, %v2171_v6  ;;  %v1627_v16 = vsel %vm697_vm7, %v1253_v1, %v2172_v5 }
 0x1e0   : > { %v2190_v20 = vpop.permute.xlu2 %2189 }
 0x1e1   : > { %v2192_v32 = vunpack.i.h.bf16 %v2190_v20  ;;  %v2191_v30 = vunpack.i.l.bf16 %v2190_v20 }
 0x1e8   : > { %v3119_v62 = vpop.permute.xlu2 %2194 }
 0x1e9   : > { %v2197_v4 = vunpack.i.h.bf16 %v3119_v62  ;;  %v2196_v12 = vunpack.i.l.bf16 %v3119_v62 }
 0x1ef   : > { %v3091_v57 = vpop.permute.xlu0 %2164 }
 0x1f0   : > { %v2210_v11 = vpop.permute.xlu2 %2209  ;;  %v2167_v20 = vunpack.i.h.bf16 %v3091_v57  ;;  %v2166_v43 = vunpack.i.l.bf16 %v3091_v57 }
 0x1f1   : > { %v2212_v13 = vunpack.i.h.bf16 %v2210_v11  ;;  %v2211_v26 = vunpack.i.l.bf16 %v2210_v11 }
 0x1f7   : > { %v3095_v10 = vpop.permute.xlu1 %2204  ;;  %v3097_v63 = vpop.permute.xlu0 %2174 }
 0x1f8   : > { %v3136_v0 = vpop.permute.xlu2 %2224  ;;  %v2207_v46 = vunpack.i.h.bf16 %v3095_v10  ;;  %v2177_v44 = vunpack.i.h.bf16 %v3097_v63 }
 0x1f9   : > { %v2227_v57 = vunpack.i.h.bf16 %v3136_v0  ;;  %v2226_v17 = vunpack.i.l.bf16 %v3136_v0 }
 0x1fa   : > { %v1637_v62 = vsel %vm719_vm9, %v1627_v16, %v2177_v44 }
 0x1ff   : > { %v3111_v53 = vpop.permute.xlu1 %2214  ;;  %v2180_v48 = vpop.permute.xlu0 %2179 }
 0x200   : > { %v2182_v31 = vunpack.i.h.bf16 %v2180_v48  ;;  %v2181_v50 = vunpack.i.l.bf16 %v2180_v48  ;;  %v3140_v36 = vpop.permute.xlu2 %2239  ;;  %v2176_v48 = vunpack.i.l.bf16 %v3097_v63 }
 0x202   : > { %v1670_v41 = vsel %vm1669_vm2, %v1659_v49, %v2181_v50  ;;  %v1671_v34 = vsel %vm1669_vm2, %v1660_v58, %v2182_v31  ;;  %v2206_v50 = vunpack.i.l.bf16 %v3095_v10 }
 0x203   : > { %v1681_v52 = vsel %vm1680_vm3, %v1670_v41, %v2186_v39  ;;  %v1682_v54 = vsel %vm1680_vm3, %v1671_v34, %v2187_v29  ;;  %v2217_v41 = vunpack.i.h.bf16 %v3111_v53  ;;  %v2216_v34 = vunpack.i.l.bf16 %v3111_v53 }
 0x204   : > { %v1692_v40 = vsel %vm1691_vm4, %v1681_v52, %v2191_v30  ;;  %v1693_v33 = vsel %vm1691_vm4, %v1682_v54, %v2192_v32 }
 0x205   : > { %v1702_v42 = vpack.c.bf16 %v1693_v33, %v1692_v40  ;;  %v1636_v40 = vsel %vm719_vm9, %v1626_v37, %v2176_v48 }
 0x207   : > { %v3123_v2 = vpop.permute.xlu1 %2219  ;;  %v3125_v18 = vpop.permute.xlu0 %2199  ;;  %1960 = vmatmul.msk.bf16.vlgmr.msra.gmra.mxu1 %vm1747_vm5, %v1702_v42 }
 0x208   : > { %v2222_v39 = vunpack.i.h.bf16 %v3123_v2  ;;  %v2221_v32 = vunpack.i.l.bf16 %v3123_v2  ;;  %v2280_v52 = vpop.permute.xlu2 %2279  ;;  %v2202_v2 = vunpack.i.h.bf16 %v3125_v18  ;;  %v2201_v11 = vunpack.i.l.bf16 %v3125_v18 }
 0x20a   : > { %v1646_v6 = vsel %vm741_vm11, %v1636_v40, %v2221_v32  ;;  %v2241_v32 = vunpack.i.l.bf16 %v3140_v36 }
 0x20f   : > { %v3128_v7 = vpop.permute.xlu1 %2234  ;;  %v3130_v9 = vpop.permute.xlu0 %2229 }
 0x210   : > { %v2231_v5 = vunpack.i.l.bf16 %v3130_v9  ;;  %v2236_v1 = vunpack.i.l.bf16 %v3128_v7 }
 0x217   : > { %v3132_v22 = vpop.permute.xlu1 %2249  ;;  %v3134_v60 = vpop.permute.xlu0 %2244 }
 0x218   : > { %v2251_v18 = vunpack.i.l.bf16 %v3132_v22 }
 0x21f   : > { %v2255_v51 = vpop.permute.xlu1 %2254  ;;  %v2260_v61 = vpop.permute.xlu0 %2259 }
 0x220   : > { %v2257_v19 = vunpack.i.h.bf16 %v2255_v51  ;;  %v2256_v24 = vunpack.i.l.bf16 %v2255_v51  ;;  %v2262_v45 = vunpack.i.h.bf16 %v2260_v61  ;;  %v2261_v27 = vunpack.i.l.bf16 %v2260_v61 }
 0x222   : > { %v1625_v21 = vsel %vm697_vm7, %v1251_v56, %v2257_v19  ;;  %v1624_v23 = vsel %vm697_vm7, %v1250_v35, %v2256_v24  ;;  %v1647_v19 = vsel %vm741_vm11, %v1637_v62, %v2222_v39  ;;  %v2232_v24 = vunpack.i.h.bf16 %v3130_v9 }
 0x223   : > { %v1635_v38 = vsel %vm719_vm9, %v1625_v21, %v2262_v45  ;;  %v1634_v25 = vsel %vm719_vm9, %v1624_v23, %v2261_v27  ;;  %v2252_v56 = vunpack.i.h.bf16 %v3132_v22  ;;  %v1640_v45 = vsel %vm741_vm11, %v3069_v28, %v2196_v12 }
 0x224   : > { %v1641_v27 = vsel %vm741_vm11, %v3066_v55, %v2197_v4  ;;  %v1656_v9 = vsel %vm763_vm13, %v1646_v6, %v2226_v17  ;;  %v1657_v37 = vsel %vm763_vm13, %v1647_v19, %v2227_v57  ;;  %v1650_v0 = vsel %vm763_vm13, %v1640_v45, %v2201_v11 }
 0x225   : > { %v1651_v22 = vsel %vm763_vm13, %v1641_v27, %v2202_v2  ;;  %v1667_v21 = vsel %vm1658_vm1, %v1656_v9, %v2231_v5  ;;  %v1668_v28 = vsel %vm1658_vm1, %v1657_v37, %v2232_v24  ;;  %v1661_v55 = vsel %vm1658_vm1, %v1650_v0, %v2251_v18 }
 0x226   : > { %v1662_v23 = vsel %vm1658_vm1, %v1651_v22, %v2252_v56  ;;  %v2282_v4 = vunpack.i.h.bf16 %v2280_v52  ;;  %v2281_v12 = vunpack.i.l.bf16 %v2280_v52  ;;  %v2242_v39 = vunpack.i.h.bf16 %v3140_v36 }
 0x227   : > { %v2270_v14 = vpop.permute.xlu1 %2269  ;;  %v3151_v15 = vpop.permute.xlu0 %2264 }
 0x228   : > { %v2272_v59 = vunpack.i.h.bf16 %v2270_v14  ;;  %v2271_v3 = vunpack.i.l.bf16 %v2270_v14  ;;  %v1678_v14 = vsel %vm1669_vm2, %v1667_v21, %v2236_v1  ;;  %v2267_v44 = vunpack.i.h.bf16 %v3151_v15 }
 0x229   : > { %v2266_v48 = vunpack.i.l.bf16 %v3151_v15 }
 0x22a   : > { %v1644_v49 = vsel %vm741_vm11, %v1634_v25, %v2271_v3  ;;  %v1645_v31 = vsel %vm741_vm11, %v1635_v38, %v2272_v59  ;;  %v2246_v59 = vunpack.i.l.bf16 %v3134_v60 }
 0x22b   : > { %v1654_v58 = vsel %vm763_vm13, %v1644_v49, %v2146_v8  ;;  %v1655_v29 = vsel %vm763_vm13, %v1645_v31, %v2147_v47  ;;  %v2237_v8 = vunpack.i.h.bf16 %v3128_v7 }
 0x22c   : > { %v1665_v30 = vsel %vm1658_vm1, %v1654_v58, %v2166_v43  ;;  %v1666_v63 = vsel %vm1658_vm1, %v1655_v29, %v2167_v20  ;;  %v2295_v20 = vpop.permute.xlu2 %2294  ;;  %v2247_v43 = vunpack.i.h.bf16 %v3134_v60 }
 0x22d   : > { %v1676_v10 = vsel %vm1669_vm2, %v1665_v30, %v2206_v50  ;;  %v1677_v54 = vsel %vm1669_vm2, %v1666_v63, %v2207_v46  ;;  %v1673_v46 = vsel %vm1669_vm2, %v1662_v23, %v2282_v4  ;;  %v1248_v30 = vld [vmem:[#allocation2 + $0x20] sm:$0xff]  ;;  %v1249_v63 = vld [vmem:[#allocation2 + $0x28] sm:$0xff]  ;;  %v2297_v2 = vunpack.i.h.bf16 %v2295_v20 }
 0x22e   : > { %v1687_v33 = vsel %vm1680_vm3, %v1676_v10, %v2211_v26  ;;  %v1688_v42 = vsel %vm1680_vm3, %v1677_v54, %v2212_v13  ;;  %v1679_v13 = vsel %vm1669_vm2, %v1668_v28, %v2237_v8  ;;  %v1672_v26 = vsel %vm1669_vm2, %v1661_v55, %v2281_v12  ;;  %v2324_v4 = vld [vmem:[%s3280_s4] ss:$0 sm:$0xff] }
 0x22f   : > { %v3179_v51 = vpop.permute.xlu1 %2274  ;;  %v1698_v53 = vsel %vm1691_vm4, %v1687_v33, %v2216_v34  ;;  %v1699_v61 = vsel %vm1691_vm4, %v1688_v42, %v2217_v41  ;;  %v2285_v47 = vpop.permute.xlu0 %2284  ;;  %v1623_v41 = vsel %vm697_vm7, %v1249_v63, %v2247_v43  ;;  %v1622_v34 = vsel %vm697_vm7, %v1248_v30, %v2246_v59 }
 0x230   : > { %v1705_v35 = vpack.c.bf16 %v1699_v61, %v1698_v53  ;;  %v2287_v16 = vunpack.i.h.bf16 %v2285_v47  ;;  %v2286_v7 = vunpack.i.l.bf16 %v2285_v47  ;;  %v2277_v50 = vunpack.i.h.bf16 %v3179_v51 }
 0x231   : > { %v2276_v57 = vunpack.i.l.bf16 %v3179_v51  ;;  %v1632_v52 = vsel %vm719_vm9, %v1622_v34, %v2266_v48  ;;  %v1633_v10 = vsel %vm719_vm9, %v1623_v41, %v2267_v44  ;;  %v1689_v54 = vsel %vm1680_vm3, %v1678_v14, %v2241_v32 }
 0x232   : > { %1963 = vmatmul.msk.bf16.vlgmr.msra.gmra.mxu2 %vm1747_vm5, %v1705_v35  ;;  %v1683_v49 = vsel %vm1680_vm3, %v1672_v26, %v2286_v7  ;;  %v1684_v31 = vsel %vm1680_vm3, %v1673_v46, %v2287_v16  ;;  %v1690_v62 = vsel %vm1680_vm3, %v1679_v13, %v2242_v39  ;;  %v2296_v11 = vunpack.i.l.bf16 %v2295_v20 }
 0x233   : > { %v1700_v36 = vsel %vm1691_vm4, %v1689_v54, %v2276_v57  ;;  %v1701_v42 = vsel %vm1691_vm4, %v1690_v62, %v2277_v50  ;;  %v1643_v24 = vsel %vm741_vm11, %v1633_v10, %v2297_v2 }
 0x234   : > { %v2310_v6 = vpop.permute.xlu2 %2309  ;;  %v1642_v19 = vsel %vm741_vm11, %v1632_v52, %v2296_v11  ;;  %v1706_v5 = vpack.c.bf16 %v1701_v42, %v1700_v36 }
 0x235   : > { %v2312_v35 = vunpack.i.h.bf16 %v2310_v6  ;;  %v2311_v45 = vunpack.i.l.bf16 %v2310_v6 }
 0x237   : > { %v2290_v3 = vpop.permute.xlu1 %2289  ;;  %v2300_v60 = vpop.permute.xlu0 %2299 }
 0x238   : > { %v2292_v38 = vunpack.i.h.bf16 %v2290_v3  ;;  %v2291_v25 = vunpack.i.l.bf16 %v2290_v3  ;;  %v2302_v40 = vunpack.i.h.bf16 %v2300_v60  ;;  %v2301_v33 = vunpack.i.l.bf16 %v2300_v60 }
 0x23a   : > { %v1694_v58 = vsel %vm1691_vm4, %v1683_v49, %v2291_v25  ;;  %v1695_v29 = vsel %vm1691_vm4, %v1684_v31, %v2292_v38  ;;  %v1652_v47 = vsel %vm763_vm13, %v1642_v19, %v2301_v33  ;;  %v1653_v17 = vsel %vm763_vm13, %v1643_v24, %v2302_v40 }
 0x23b   : > { %v1703_v15 = vpack.c.bf16 %v1695_v29, %v1694_v58 }
 0x23d   : > { %1961 = vmatmul.msk.bf16.gmra.mxu1 %vm1747_vm5, %v1703_v15 }
 0x23f   : > { %v2305_v51 = vpop.permute.xlu1 %2304  ;;  %v2315_v27 = vpop.permute.xlu0 %2314 }
 0x240   : > { %v2307_v53 = vunpack.i.h.bf16 %v2305_v51  ;;  %v2306_v61 = vunpack.i.l.bf16 %v2305_v51  ;;  %v2317_v9 = vunpack.i.h.bf16 %v2315_v27  ;;  %v2316_v37 = vunpack.i.l.bf16 %v2315_v27 }
 0x242   : > { %v1663_v56 = vsel %vm1658_vm1, %v1652_v47, %v2306_v61  ;;  %v1664_v18 = vsel %vm1658_vm1, %v1653_v17, %v2307_v53  ;;  %1964 = vmatmul.msk.bf16.gmra.mxu2 %vm1747_vm5, %v1706_v5 }
 0x243   : > { %v1674_v8 = vsel %vm1669_vm2, %v1663_v56, %v2311_v45  ;;  %v1675_v1 = vsel %vm1669_vm2, %v1664_v18, %v2312_v35 }
 0x244   : > { %v1685_v28 = vsel %vm1680_vm3, %v1674_v8, %v2316_v37  ;;  %v1686_v55 = vsel %vm1680_vm3, %v1675_v1, %v2317_v9 }
 0x247   : > { %v2320_v0 = vpop.permute.xlu1 %2319 }
 0x248   : > { %v2322_v22 = vunpack.i.h.bf16 %v2320_v0  ;;  %v2321_v21 = vunpack.i.l.bf16 %v2320_v0 }
 0x24a   : > { %v1696_v23 = vsel %vm1691_vm4, %v1685_v28, %v2321_v21  ;;  %v1697_v16 = vsel %vm1691_vm4, %v1686_v55, %v2322_v22 }
 0x24b   : > { %v1704_v7 = vpack.c.bf16 %v1697_v16, %v1696_v23 }
 0x24d   : > { %1962 = vmatmul.msk.bf16.gmra.mxu1 %vm1747_vm5, %v1704_v7 }
 0x284   : > { %v1776_v12 = vpop.f32.mrf.mxu1 }
 0x285   : > { %v1777_v20 = vadd.f32 %v2324_v4, %v1776_v12 }
 0x287   : > { %v1801_v14 = vmax.f32 %v1777_v20, 0.0 }
 0x289   : > { %1811 = vst.msk [vmem:[%s3251_s11] sm:$0xff] %vm697_vm7, %v1801_v14 }
 0x28c   : > { %v1778_v13 = vpop.f32.mrf.mxu1 }
 0x28d   : > { %v1779_v43 = vadd.f32 %v2324_v4, %v1778_v13 }
 0x28f   : > { %v1802_v59 = vmax.f32 %v1779_v43, 0.0 }
 0x291   : > { %1812 = vst.msk [vmem:[%s3251_s11 + $0x8] sm:$0xff] %vm697_vm7, %v1802_v59 }
 0x2b5   : > { %v1791_v3 = vpop.f32.mrf.mxu2 }
 0x2b6   : > { %v1792_v26 = vadd.f32 %v2324_v4, %v1791_v3 }
 0x2b8   : > { %v1807_v46 = vmax.f32 %v1792_v26, 0.0 }
 0x2ba   : > { %v1781_v38 = vpop.f32.mrf.mxu1  ;;  %1817 = vst.msk [vmem:[%s3251_s11 + $0x30] sm:$0xff] %vm697_vm7, %v1807_v46 }
 0x2bb   : > { %v1782_v25 = vadd.f32 %v2324_v4, %v1781_v38 }
 0x2bd   : > { %v1803_v44 = vmax.f32 %v1782_v25, 0.0  ;;  %v1793_v48 = vpop.f32.mrf.mxu2 }
 0x2be   : > { %v1794_v49 = vadd.f32 %v2324_v4, %v1793_v48 }
 0x2bf   : > { %1813 = vst.msk [vmem:[%s3251_s11 + $0x10] sm:$0xff] %vm697_vm7, %v1803_v44 }
 0x2c0   : > { %v1808_v31 = vmax.f32 %v1794_v49, 0.0 }
 0x2c2   : > { %v1783_v50 = vpop.f32.mrf.mxu1  ;;  %1818 = vst.msk [vmem:[%s3251_s11 + $0x38] sm:$0xff] %vm697_vm7, %v1808_v31 }
 0x2c3   : > { %v1784_v57 = vadd.f32 %v2324_v4, %v1783_v50 }
 0x2c5   : > { %v1804_v60 = vmax.f32 %v1784_v57, 0.0  ;;  %v1796_v58 = vpop.f32.mrf.mxu2 }
 0x2c6   : > { %v1797_v29 = vadd.f32 %v2324_v4, %v1796_v58 }
 0x2c7   : > { %1814 = vst.msk [vmem:[%s3251_s11 + $0x18] sm:$0xff] %vm697_vm7, %v1804_v60 }
 0x2c8   : > { %v1809_v39 = vmax.f32 %v1797_v29, 0.0 }
 0x2ca   : > { %v1786_v32 = vpop.f32.mrf.mxu1  ;;  %1819 = vst.msk [vmem:[%s3251_s11 + $0x40] sm:$0xff] %vm697_vm7, %v1809_v39 }
 0x2cb   : > { %v1787_v30 = vadd.f32 %v2324_v4, %v1786_v32 }
 0x2cd   : > { %v1805_v63 = vmax.f32 %v1787_v30, 0.0  ;;  %v1798_v15 = vpop.f32.mrf.mxu2 }
 0x2ce   : > { %v1799_v41 = vadd.f32 %v2324_v4, %v1798_v15 }
 0x2cf   : > { %1815 = vst.msk [vmem:[%s3251_s11 + $0x20] sm:$0xff] %vm697_vm7, %v1805_v63 }
 0x2d0   : > { %v1810_v34 = vmax.f32 %v1799_v41, 0.0 }
 0x2d2   : > { %v1788_v52 = vpop.f32.mrf.mxu1  ;;  %1820 = vst.msk [vmem:[%s3251_s11 + $0x48] sm:$0xff] %vm697_vm7, %v1810_v34 }
 0x2d3   : > { %v1789_v10 = vadd.f32 %v2324_v4, %v1788_v52 }
 0x2d5   : > { %v1806_v54 = vmax.f32 %v1789_v10, 0.0 }
 0x2d7   : > { %1816 = vst.msk [vmem:[%s3251_s11 + $0x28] sm:$0xff] %vm697_vm7, %v1806_v54 }
 0x2d8 PF: > { %s15_s18 = sadd.s32 1, %s2331_s18  }
 0x2d9   : > { %p12_p4 = scmp.ge.s32.totalorder %s15_s18, 4  }
 0x2db   :  { %14 = sbr.rel (!%p12_p4) target bundleno = 1 (0x1), region = 70 }

</bundles_post_ra>
